<compile_context>
chip_gen: v6e
topology: v6e:2x2x1
jax: 0.10.0
libtpu: 0.0.40
codegen_flags: <defaults>
</compile_context>

<pallas_src>
import functools
import math

import jax
import jax.numpy as jnp
from jax.experimental import pallas as pl
from jax.experimental.pallas import tpu as pltpu

LANE = 128


def _conv_kernel_fused(x_ref, w_ref, b_ref, o_ref, *, C, KH, KW):
    """Small-batch path: lanes = (batch, W) fused; all output rows at once.

    x_ref: (C, H, L) VMEM with L = Nblk*W (n-major, w-minor)
    w_ref: (OC*C*KH*KW,) SMEM      b_ref: (OC,) SMEM
    o_ref: (OCg, OH, L) VMEM       (this grid step's output-channel group)
    """
    OCg, OH, L = o_ref.shape
    H = x_ref.shape[1]
    K = C * KH * KW
    oc0 = pl.program_id(0) * OCg

    # Zero-init accumulators; bias is added as a scalar at store time.
    accs = [jnp.zeros((H, L), jnp.float32) for _ in range(OCg)]
    for c in range(C):
        slab = x_ref[c].astype(jnp.float32)                        # (H, L)
        for kh in range(KH):
            # kh shift = sublane rotate on the XLU (no unaligned slices).
            rows = slab if kh == 0 else pltpu.roll(slab, shift=H - kh, axis=0)
            for kw in range(KW):
                # kw shift = lane rotate; stays inside each image's W segment
                # for every ow < OW (the ow >= OW tail wraps but is never kept).
                patch = rows if kw == 0 else pltpu.roll(rows, shift=L - kw, axis=1)
                base = (c * KH + kh) * KW + kw
                for oc in range(OCg):
                    accs[oc] = accs[oc] + patch * w_ref[(oc0 + oc) * K + base]
    for oc in range(OCg):
        # Single aligned leading slice + scalar bias add at store time.
        o_ref[oc] = (accs[oc][:OH] + b_ref[oc0 + oc]).astype(o_ref.dtype)


def _conv_kernel_batch_lanes(x_ref, w_ref, b_ref, o_ref):
    """Large-batch path: lanes = batch; rolled loop over output rows.

    x_ref: (C, H, W, Nb) VMEM
    w_ref: (OC*C*KH*KW,) SMEM      b_ref: (OC,) SMEM
    o_ref: (OCg, OH, OW, Nb) VMEM  (this grid step's output-channel group)
    """
    OCg, OH, OW, Nb = o_ref.shape
    C, H, W, _ = x_ref.shape
    KH, KW = H - OH + 1, W - OW + 1
    K = C * KH * KW
    oc0 = pl.program_id(1) * OCg

    def row_body(oh, carry):
        # Per-row accumulators only; the rolled loop bounds live vreg state.
        accs = [jnp.zeros((W, Nb), jnp.float32) for _ in range(OCg)]
        for c in range(C):
            for kh in range(KH):
                row = x_ref[c, oh + kh].astype(jnp.float32)        # (W, Nb)
                for kw in range(KW):
                    # kw shift = sublane rotate (XLU), full-width; rows with
                    # index >= OW wrap around but are never stored.
                    patch = row if kw == 0 else pltpu.roll(row, shift=W - kw, axis=0)
                    base = (c * KH + kh) * KW + kw
                    for oc in range(OCg):
                        accs[oc] = accs[oc] + patch * w_ref[(oc0 + oc) * K + base]
        for oc in range(OCg):
            o_ref[oc, oh] = (accs[oc][:OW] + b_ref[oc0 + oc]).astype(o_ref.dtype)
        return carry

    jax.lax.fori_loop(0, OH, row_body, 0)


def conv2d_pallas(x, w, b, block_n=512):
    """VALID conv, stride 1. x:(N,C,H,W), w:(OC,C,KH,KW), b:(OC,) -> (N,OC,OH,OW)."""
    N, C, H, W = x.shape
    OC, _, KH, KW = w.shape
    OH, OW = H - KH + 1, W - KW + 1

    w_flat = w.reshape(-1).astype(jnp.float32)
    b = b.astype(jnp.float32)

    # Split output channels into two "parallel" grid groups (OC even): always
    # >= 2 grid steps for v7x's two TensorCores, and halves acc vreg pressure.
    ocg_n = 2 if OC % 2 == 0 else 1
    OCg = OC // ocg_n

    # ---------------- small-batch path: lanes = (batch, W) fused --------------
    q = LANE // math.gcd(W, LANE)          # images needed per 128 lanes
    Np_a = pl.cdiv(N, q) * q
    L = Np_a * W
    acc_vregs = OCg * ((H + 7) // 8) * (L // LANE)
    if N < LANE and L <= 1024 and acc_vregs <= 32:
        x_t = jnp.transpose(x, (1, 2, 0, 3))                       # (C,H,N,W)
        if Np_a != N:
            x_t = jnp.pad(x_t, ((0, 0), (0, 0), (0, Np_a - N), (0, 0)))
        x_t = x_t.reshape(C, H, L)
        kernel = functools.partial(_conv_kernel_fused, C=C, KH=KH, KW=KW)
        out_t = pl.pallas_call(
            kernel,
            out_shape=jax.ShapeDtypeStruct((OC, OH, L), x.dtype),
            grid_spec=pltpu.PrefetchScalarGridSpec(
                num_scalar_prefetch=0,
                grid=(ocg_n,),
                in_specs=[
                    pl.BlockSpec((C, H, L), lambda g: (0, 0, 0)),
                    pl.BlockSpec(memory_space=pltpu.MemorySpace.SMEM),
                    pl.BlockSpec(memory_space=pltpu.MemorySpace.SMEM),
                ],
                out_specs=pl.BlockSpec((OCg, OH, L), lambda g: (g, 0, 0)),
            ),
            compiler_params=pltpu.CompilerParams(
                dimension_semantics=("parallel",),
                vmem_limit_bytes=32 * 1024 * 1024,
            ),
        )(x_t, w_flat, b)
        out = out_t.reshape(OC, OH, Np_a, W)[:, :, :N, :OW]
        return jnp.transpose(out, (2, 0, 1, 3))

    # ---------------- large-batch path: lanes = batch -------------------------
    block_n = max(LANE, (block_n // LANE) * LANE)   # multiple of 128
    Np = pl.cdiv(N, LANE) * LANE
    block_n = min(block_n, Np)
    Np = pl.cdiv(Np, block_n) * block_n
    n_blocks = Np // block_n

    # TODO(synk): for multi-layer nets keep activations in this (C,H,W,N)
    # lane-major layout between convs; the NCHW transposes/pads here exist only
    # to match the PyTorch module's input/output convention.
    x_t = jnp.transpose(x, (1, 2, 3, 0))                           # (C,H,W,N)
    if Np != N:
        x_t = jnp.pad(x_t, ((0, 0), (0, 0), (0, 0), (0, Np - N)))

    out_t = pl.pallas_call(
        _conv_kernel_batch_lanes,
        out_shape=jax.ShapeDtypeStruct((OC, OH, OW, Np), x.dtype),
        grid_spec=pltpu.PrefetchScalarGridSpec(
            num_scalar_prefetch=0,
            grid=(n_blocks, ocg_n),
            in_specs=[
                pl.BlockSpec((C, H, W, block_n), lambda n, g: (0, 0, 0, n)),
                pl.BlockSpec(memory_space=pltpu.MemorySpace.SMEM),
                pl.BlockSpec(memory_space=pltpu.MemorySpace.SMEM),
            ],
            out_specs=pl.BlockSpec((OCg, OH, OW, block_n),
                                   lambda n, g: (g, 0, 0, n)),
        ),
        compiler_params=pltpu.CompilerParams(
            dimension_semantics=("parallel", "parallel"),
            vmem_limit_bytes=32 * 1024 * 1024,
        ),
    )(x_t, w_flat, b)
    return jnp.transpose(out_t[..., :N], (3, 0, 1, 2))


def init_params(key, in_channels=3, out_channels=6, kernel_size=3):
    """Deterministic PyTorch-style uniform(-1/sqrt(fan_in), 1/sqrt(fan_in)) init."""
    w_key, b_key = jax.random.split(key)
    fan_in = in_channels * kernel_size * kernel_size
    bound = 1.0 / math.sqrt(fan_in)
    w = jax.random.uniform(
        w_key, (out_channels, in_channels, kernel_size, kernel_size),
        dtype=jnp.float32, minval=-bound, maxval=bound)
    b = jax.random.uniform(
        b_key, (out_channels,), dtype=jnp.float32, minval=-bound, maxval=bound)
    return w, b


if __name__ == "__main__":
    key = jax.random.PRNGKey(0)
    x_key, x2_key, p_key = jax.random.split(key, 3)
    w, b = init_params(p_key)

    def reference(x):
        return jax.lax.conv_general_dilated(
            x, w, window_strides=(1, 1), padding="VALID",
            dimension_numbers=("NCHW", "OIHW", "NCHW"),
            precision=jax.lax.Precision.HIGHEST) + b[None, :, None, None]

    # Module-sized small input (N=2): exercises the fused-lane small-batch path.
    x_small = jax.random.normal(x_key, (2, 3, 16, 16), dtype=jnp.float32)
    out_small = jax.block_until_ready(conv2d_pallas(x_small, w, b))
    ref_small = reference(x_small)
    assert out_small.shape == (2, 6, 14, 14), out_small.shape
    assert jnp.allclose(out_small, ref_small, atol=1e-4, rtol=1e-4), \
        float(jnp.max(jnp.abs(out_small - ref_small)))

    # Larger batch: exercises the batch-in-lanes path with the OC-split grid.
    x_big = jax.random.normal(x2_key, (256, 3, 16, 16), dtype=jnp.float32)
    out_big = jax.block_until_ready(conv2d_pallas(x_big, w, b))
    ref_big = reference(x_big)
    assert out_big.shape == (256, 6, 14, 14), out_big.shape
    assert jnp.allclose(out_big, ref_big, atol=1e-4, rtol=1e-4), \
        float(jnp.max(jnp.abs(out_big - ref_big)))

    print("KERNEL_OK")
</pallas_src>

<mosaic_0001>
module attributes {stable_mosaic.version = 11 : i64} {
  func.func @_conv_kernel_fused(%arg0: i32, %arg1: memref<3x16x128xf32, #tpu.memory_space<vmem>>, %arg2: memref<162xf32, #tpu.memory_space<smem>>, %arg3: memref<6xf32, #tpu.memory_space<smem>>, %arg4: memref<3x14x128xf32, #tpu.memory_space<vmem>>) attributes {dimension_semantics = [#tpu.dimension_semantics<parallel>], iteration_bounds = array<i64: 2>, scalar_prefetch = 0 : i64, scratch_operands = 0 : i64, tpu.core_type = #tpu.core_type<tc>, window_params = [{pipeline_mode = #tpu.pipeline_mode<synchronous>, transform_indices = @transform_0, window_bounds = array<i64: 3, 16, 128>}, {transform_indices = @transform_1, window_bounds = array<i64: 162>}, {transform_indices = @transform_2, window_bounds = array<i64: 6>}, {transform_indices = @transform_3, window_bounds = array<i64: 3, 14, 128>}]} {
    %c3_i32 = arith.constant 3 : i32
    %0 = arith.muli %arg0, %c3_i32 : i32
    %cst = arith.constant 0.000000e+00 : f32
    %1 = vector.broadcast %cst : f32 to vector<16x128xf32>
    %cst_0 = arith.constant 0.000000e+00 : f32
    %2 = vector.broadcast %cst_0 : f32 to vector<16x128xf32>
    %cst_1 = arith.constant 0.000000e+00 : f32
    %3 = vector.broadcast %cst_1 : f32 to vector<16x128xf32>
    %c0 = arith.constant 0 : index
    %c0_2 = arith.constant 0 : index
    %c0_3 = arith.constant 0 : index
    %4 = vector.load %arg1[%c0, %c0_2, %c0_3] : memref<3x16x128xf32, #tpu.memory_space<vmem>>, vector<1x16x128xf32>
    %5 = vector.shape_cast %4 : vector<1x16x128xf32> to vector<16x128xf32>
    %c0_i32 = arith.constant 0 : i32
    %6 = arith.addi %0, %c0_i32 : i32
    %c27_i32 = arith.constant 27 : i32
    %7 = arith.muli %6, %c27_i32 : i32
    %c0_i32_4 = arith.constant 0 : i32
    %8 = arith.addi %7, %c0_i32_4 : i32
    %9 = arith.index_cast %8 : i32 to index
    %10 = memref.load %arg2[%9] : memref<162xf32, #tpu.memory_space<smem>>
    %11 = vector.broadcast %10 : f32 to vector<16x128xf32>
    %12 = arith.mulf %5, %11 : vector<16x128xf32>
    %13 = arith.addf %1, %12 : vector<16x128xf32>
    %c1_i32 = arith.constant 1 : i32
    %14 = arith.addi %0, %c1_i32 : i32
    %c27_i32_5 = arith.constant 27 : i32
    %15 = arith.muli %14, %c27_i32_5 : i32
    %c0_i32_6 = arith.constant 0 : i32
    %16 = arith.addi %15, %c0_i32_6 : i32
    %17 = arith.index_cast %16 : i32 to index
    %18 = memref.load %arg2[%17] : memref<162xf32, #tpu.memory_space<smem>>
    %19 = vector.broadcast %18 : f32 to vector<16x128xf32>
    %20 = arith.mulf %5, %19 : vector<16x128xf32>
    %21 = arith.addf %2, %20 : vector<16x128xf32>
    %c2_i32 = arith.constant 2 : i32
    %22 = arith.addi %0, %c2_i32 : i32
    %c27_i32_7 = arith.constant 27 : i32
    %23 = arith.muli %22, %c27_i32_7 : i32
    %c0_i32_8 = arith.constant 0 : i32
    %24 = arith.addi %23, %c0_i32_8 : i32
    %25 = arith.index_cast %24 : i32 to index
    %26 = memref.load %arg2[%25] : memref<162xf32, #tpu.memory_space<smem>>
    %27 = vector.broadcast %26 : f32 to vector<16x128xf32>
    %28 = arith.mulf %5, %27 : vector<16x128xf32>
    %29 = arith.addf %3, %28 : vector<16x128xf32>
    %c127_i32 = arith.constant 127 : i32
    %30 = tpu.dynamic_rotate %5 by %c127_i32 dim 1 : vector<16x128xf32>, i32 -> vector<16x128xf32>
    %c0_i32_9 = arith.constant 0 : i32
    %31 = arith.addi %0, %c0_i32_9 : i32
    %c27_i32_10 = arith.constant 27 : i32
    %32 = arith.muli %31, %c27_i32_10 : i32
    %c1_i32_11 = arith.constant 1 : i32
    %33 = arith.addi %32, %c1_i32_11 : i32
    %34 = arith.index_cast %33 : i32 to index
    %35 = memref.load %arg2[%34] : memref<162xf32, #tpu.memory_space<smem>>
    %36 = vector.broadcast %35 : f32 to vector<16x128xf32>
    %37 = arith.mulf %30, %36 : vector<16x128xf32>
    %38 = arith.addf %13, %37 : vector<16x128xf32>
    %c1_i32_12 = arith.constant 1 : i32
    %39 = arith.addi %0, %c1_i32_12 : i32
    %c27_i32_13 = arith.constant 27 : i32
    %40 = arith.muli %39, %c27_i32_13 : i32
    %c1_i32_14 = arith.constant 1 : i32
    %41 = arith.addi %40, %c1_i32_14 : i32
    %42 = arith.index_cast %41 : i32 to index
    %43 = memref.load %arg2[%42] : memref<162xf32, #tpu.memory_space<smem>>
    %44 = vector.broadcast %43 : f32 to vector<16x128xf32>
    %45 = arith.mulf %30, %44 : vector<16x128xf32>
    %46 = arith.addf %21, %45 : vector<16x128xf32>
    %c2_i32_15 = arith.constant 2 : i32
    %47 = arith.addi %0, %c2_i32_15 : i32
    %c27_i32_16 = arith.constant 27 : i32
    %48 = arith.muli %47, %c27_i32_16 : i32
    %c1_i32_17 = arith.constant 1 : i32
    %49 = arith.addi %48, %c1_i32_17 : i32
    %50 = arith.index_cast %49 : i32 to index
    %51 = memref.load %arg2[%50] : memref<162xf32, #tpu.memory_space<smem>>
    %52 = vector.broadcast %51 : f32 to vector<16x128xf32>
    %53 = arith.mulf %30, %52 : vector<16x128xf32>
    %54 = arith.addf %29, %53 : vector<16x128xf32>
    %c126_i32 = arith.constant 126 : i32
    %55 = tpu.dynamic_rotate %5 by %c126_i32 dim 1 : vector<16x128xf32>, i32 -> vector<16x128xf32>
    %c0_i32_18 = arith.constant 0 : i32
    %56 = arith.addi %0, %c0_i32_18 : i32
    %c27_i32_19 = arith.constant 27 : i32
    %57 = arith.muli %56, %c27_i32_19 : i32
    %c2_i32_20 = arith.constant 2 : i32
    %58 = arith.addi %57, %c2_i32_20 : i32
    %59 = arith.index_cast %58 : i32 to index
    %60 = memref.load %arg2[%59] : memref<162xf32, #tpu.memory_space<smem>>
    %61 = vector.broadcast %60 : f32 to vector<16x128xf32>
    %62 = arith.mulf %55, %61 : vector<16x128xf32>
    %63 = arith.addf %38, %62 : vector<16x128xf32>
    %c1_i32_21 = arith.constant 1 : i32
    %64 = arith.addi %0, %c1_i32_21 : i32
    %c27_i32_22 = arith.constant 27 : i32
    %65 = arith.muli %64, %c27_i32_22 : i32
    %c2_i32_23 = arith.constant 2 : i32
    %66 = arith.addi %65, %c2_i32_23 : i32
    %67 = arith.index_cast %66 : i32 to index
    %68 = memref.load %arg2[%67] : memref<162xf32, #tpu.memory_space<smem>>
    %69 = vector.broadcast %68 : f32 to vector<16x128xf32>
    %70 = arith.mulf %55, %69 : vector<16x128xf32>
    %71 = arith.addf %46, %70 : vector<16x128xf32>
    %c2_i32_24 = arith.constant 2 : i32
    %72 = arith.addi %0, %c2_i32_24 : i32
    %c27_i32_25 = arith.constant 27 : i32
    %73 = arith.muli %72, %c27_i32_25 : i32
    %c2_i32_26 = arith.constant 2 : i32
    %74 = arith.addi %73, %c2_i32_26 : i32
    %75 = arith.index_cast %74 : i32 to index
    %76 = memref.load %arg2[%75] : memref<162xf32, #tpu.memory_space<smem>>
    %77 = vector.broadcast %76 : f32 to vector<16x128xf32>
    %78 = arith.mulf %55, %77 : vector<16x128xf32>
    %79 = arith.addf %54, %78 : vector<16x128xf32>
    %c15_i32 = arith.constant 15 : i32
    %80 = tpu.dynamic_rotate %5 by %c15_i32 dim 0 : vector<16x128xf32>, i32 -> vector<16x128xf32>
    %c0_i32_27 = arith.constant 0 : i32
    %81 = arith.addi %0, %c0_i32_27 : i32
    %c27_i32_28 = arith.constant 27 : i32
    %82 = arith.muli %81, %c27_i32_28 : i32
    %c3_i32_29 = arith.constant 3 : i32
    %83 = arith.addi %82, %c3_i32_29 : i32
    %84 = arith.index_cast %83 : i32 to index
    %85 = memref.load %arg2[%84] : memref<162xf32, #tpu.memory_space<smem>>
    %86 = vector.broadcast %85 : f32 to vector<16x128xf32>
    %87 = arith.mulf %80, %86 : vector<16x128xf32>
    %88 = arith.addf %63, %87 : vector<16x128xf32>
    %c1_i32_30 = arith.constant 1 : i32
    %89 = arith.addi %0, %c1_i32_30 : i32
    %c27_i32_31 = arith.constant 27 : i32
    %90 = arith.muli %89, %c27_i32_31 : i32
    %c3_i32_32 = arith.constant 3 : i32
    %91 = arith.addi %90, %c3_i32_32 : i32
    %92 = arith.index_cast %91 : i32 to index
    %93 = memref.load %arg2[%92] : memref<162xf32, #tpu.memory_space<smem>>
    %94 = vector.broadcast %93 : f32 to vector<16x128xf32>
    %95 = arith.mulf %80, %94 : vector<16x128xf32>
    %96 = arith.addf %71, %95 : vector<16x128xf32>
    %c2_i32_33 = arith.constant 2 : i32
    %97 = arith.addi %0, %c2_i32_33 : i32
    %c27_i32_34 = arith.constant 27 : i32
    %98 = arith.muli %97, %c27_i32_34 : i32
    %c3_i32_35 = arith.constant 3 : i32
    %99 = arith.addi %98, %c3_i32_35 : i32
    %100 = arith.index_cast %99 : i32 to index
    %101 = memref.load %arg2[%100] : memref<162xf32, #tpu.memory_space<smem>>
    %102 = vector.broadcast %101 : f32 to vector<16x128xf32>
    %103 = arith.mulf %80, %102 : vector<16x128xf32>
    %104 = arith.addf %79, %103 : vector<16x128xf32>
    %c127_i32_36 = arith.constant 127 : i32
    %105 = tpu.dynamic_rotate %80 by %c127_i32_36 dim 1 : vector<16x128xf32>, i32 -> vector<16x128xf32>
    %c0_i32_37 = arith.constant 0 : i32
    %106 = arith.addi %0, %c0_i32_37 : i32
    %c27_i32_38 = arith.constant 27 : i32
    %107 = arith.muli %106, %c27_i32_38 : i32
    %c4_i32 = arith.constant 4 : i32
    %108 = arith.addi %107, %c4_i32 : i32
    %109 = arith.index_cast %108 : i32 to index
    %110 = memref.load %arg2[%109] : memref<162xf32, #tpu.memory_space<smem>>
    %111 = vector.broadcast %110 : f32 to vector<16x128xf32>
    %112 = arith.mulf %105, %111 : vector<16x128xf32>
    %113 = arith.addf %88, %112 : vector<16x128xf32>
    %c1_i32_39 = arith.constant 1 : i32
    %114 = arith.addi %0, %c1_i32_39 : i32
    %c27_i32_40 = arith.constant 27 : i32
    %115 = arith.muli %114, %c27_i32_40 : i32
    %c4_i32_41 = arith.constant 4 : i32
    %116 = arith.addi %115, %c4_i32_41 : i32
    %117 = arith.index_cast %116 : i32 to index
    %118 = memref.load %arg2[%117] : memref<162xf32, #tpu.memory_space<smem>>
    %119 = vector.broadcast %118 : f32 to vector<16x128xf32>
    %120 = arith.mulf %105, %119 : vector<16x128xf32>
    %121 = arith.addf %96, %120 : vector<16x128xf32>
    %c2_i32_42 = arith.constant 2 : i32
    %122 = arith.addi %0, %c2_i32_42 : i32
    %c27_i32_43 = arith.constant 27 : i32
    %123 = arith.muli %122, %c27_i32_43 : i32
    %c4_i32_44 = arith.constant 4 : i32
    %124 = arith.addi %123, %c4_i32_44 : i32
    %125 = arith.index_cast %124 : i32 to index
    %126 = memref.load %arg2[%125] : memref<162xf32, #tpu.memory_space<smem>>
    %127 = vector.broadcast %126 : f32 to vector<16x128xf32>
    %128 = arith.mulf %105, %127 : vector<16x128xf32>
    %129 = arith.addf %104, %128 : vector<16x128xf32>
    %c126_i32_45 = arith.constant 126 : i32
    %130 = tpu.dynamic_rotate %80 by %c126_i32_45 dim 1 : vector<16x128xf32>, i32 -> vector<16x128xf32>
    %c0_i32_46 = arith.constant 0 : i32
    %131 = arith.addi %0, %c0_i32_46 : i32
    %c27_i32_47 = arith.constant 27 : i32
    %132 = arith.muli %131, %c27_i32_47 : i32
    %c5_i32 = arith.constant 5 : i32
    %133 = arith.addi %132, %c5_i32 : i32
    %134 = arith.index_cast %133 : i32 to index
    %135 = memref.load %arg2[%134] : memref<162xf32, #tpu.memory_space<smem>>
    %136 = vector.broadcast %135 : f32 to vector<16x128xf32>
    %137 = arith.mulf %130, %136 : vector<16x128xf32>
    %138 = arith.addf %113, %137 : vector<16x128xf32>
    %c1_i32_48 = arith.constant 1 : i32
    %139 = arith.addi %0, %c1_i32_48 : i32
    %c27_i32_49 = arith.constant 27 : i32
    %140 = arith.muli %139, %c27_i32_49 : i32
    %c5_i32_50 = arith.constant 5 : i32
    %141 = arith.addi %140, %c5_i32_50 : i32
    %142 = arith.index_cast %141 : i32 to index
    %143 = memref.load %arg2[%142] : memref<162xf32, #tpu.memory_space<smem>>
    %144 = vector.broadcast %143 : f32 to vector<16x128xf32>
    %145 = arith.mulf %130, %144 : vector<16x128xf32>
    %146 = arith.addf %121, %145 : vector<16x128xf32>
    %c2_i32_51 = arith.constant 2 : i32
    %147 = arith.addi %0, %c2_i32_51 : i32
    %c27_i32_52 = arith.constant 27 : i32
    %148 = arith.muli %147, %c27_i32_52 : i32
    %c5_i32_53 = arith.constant 5 : i32
    %149 = arith.addi %148, %c5_i32_53 : i32
    %150 = arith.index_cast %149 : i32 to index
    %151 = memref.load %arg2[%150] : memref<162xf32, #tpu.memory_space<smem>>
    %152 = vector.broadcast %151 : f32 to vector<16x128xf32>
    %153 = arith.mulf %130, %152 : vector<16x128xf32>
    %154 = arith.addf %129, %153 : vector<16x128xf32>
    %c14_i32 = arith.constant 14 : i32
    %155 = tpu.dynamic_rotate %5 by %c14_i32 dim 0 : vector<16x128xf32>, i32 -> vector<16x128xf32>
    %c0_i32_54 = arith.constant 0 : i32
    %156 = arith.addi %0, %c0_i32_54 : i32
    %c27_i32_55 = arith.constant 27 : i32
    %157 = arith.muli %156, %c27_i32_55 : i32
    %c6_i32 = arith.constant 6 : i32
    %158 = arith.addi %157, %c6_i32 : i32
    %159 = arith.index_cast %158 : i32 to index
    %160 = memref.load %arg2[%159] : memref<162xf32, #tpu.memory_space<smem>>
    %161 = vector.broadcast %160 : f32 to vector<16x128xf32>
    %162 = arith.mulf %155, %161 : vector<16x128xf32>
    %163 = arith.addf %138, %162 : vector<16x128xf32>
    %c1_i32_56 = arith.constant 1 : i32
    %164 = arith.addi %0, %c1_i32_56 : i32
    %c27_i32_57 = arith.constant 27 : i32
    %165 = arith.muli %164, %c27_i32_57 : i32
    %c6_i32_58 = arith.constant 6 : i32
    %166 = arith.addi %165, %c6_i32_58 : i32
    %167 = arith.index_cast %166 : i32 to index
    %168 = memref.load %arg2[%167] : memref<162xf32, #tpu.memory_space<smem>>
    %169 = vector.broadcast %168 : f32 to vector<16x128xf32>
    %170 = arith.mulf %155, %169 : vector<16x128xf32>
    %171 = arith.addf %146, %170 : vector<16x128xf32>
    %c2_i32_59 = arith.constant 2 : i32
    %172 = arith.addi %0, %c2_i32_59 : i32
    %c27_i32_60 = arith.constant 27 : i32
    %173 = arith.muli %172, %c27_i32_60 : i32
    %c6_i32_61 = arith.constant 6 : i32
    %174 = arith.addi %173, %c6_i32_61 : i32
    %175 = arith.index_cast %174 : i32 to index
    %176 = memref.load %arg2[%175] : memref<162xf32, #tpu.memory_space<smem>>
    %177 = vector.broadcast %176 : f32 to vector<16x128xf32>
    %178 = arith.mulf %155, %177 : vector<16x128xf32>
    %179 = arith.addf %154, %178 : vector<16x128xf32>
    %c127_i32_62 = arith.constant 127 : i32
    %180 = tpu.dynamic_rotate %155 by %c127_i32_62 dim 1 : vector<16x128xf32>, i32 -> vector<16x128xf32>
    %c0_i32_63 = arith.constant 0 : i32
    %181 = arith.addi %0, %c0_i32_63 : i32
    %c27_i32_64 = arith.constant 27 : i32
    %182 = arith.muli %181, %c27_i32_64 : i32
    %c7_i32 = arith.constant 7 : i32
    %183 = arith.addi %182, %c7_i32 : i32
    %184 = arith.index_cast %183 : i32 to index
    %185 = memref.load %arg2[%184] : memref<162xf32, #tpu.memory_space<smem>>
    %186 = vector.broadcast %185 : f32 to vector<16x128xf32>
    %187 = arith.mulf %180, %186 : vector<16x128xf32>
    %188 = arith.addf %163, %187 : vector<16x128xf32>
    %c1_i32_65 = arith.constant 1 : i32
    %189 = arith.addi %0, %c1_i32_65 : i32
    %c27_i32_66 = arith.constant 27 : i32
    %190 = arith.muli %189, %c27_i32_66 : i32
    %c7_i32_67 = arith.constant 7 : i32
    %191 = arith.addi %190, %c7_i32_67 : i32
    %192 = arith.index_cast %191 : i32 to index
    %193 = memref.load %arg2[%192] : memref<162xf32, #tpu.memory_space<smem>>
    %194 = vector.broadcast %193 : f32 to vector<16x128xf32>
    %195 = arith.mulf %180, %194 : vector<16x128xf32>
    %196 = arith.addf %171, %195 : vector<16x128xf32>
    %c2_i32_68 = arith.constant 2 : i32
    %197 = arith.addi %0, %c2_i32_68 : i32
    %c27_i32_69 = arith.constant 27 : i32
    %198 = arith.muli %197, %c27_i32_69 : i32
    %c7_i32_70 = arith.constant 7 : i32
    %199 = arith.addi %198, %c7_i32_70 : i32
    %200 = arith.index_cast %199 : i32 to index
    %201 = memref.load %arg2[%200] : memref<162xf32, #tpu.memory_space<smem>>
    %202 = vector.broadcast %201 : f32 to vector<16x128xf32>
    %203 = arith.mulf %180, %202 : vector<16x128xf32>
    %204 = arith.addf %179, %203 : vector<16x128xf32>
    %c126_i32_71 = arith.constant 126 : i32
    %205 = tpu.dynamic_rotate %155 by %c126_i32_71 dim 1 : vector<16x128xf32>, i32 -> vector<16x128xf32>
    %c0_i32_72 = arith.constant 0 : i32
    %206 = arith.addi %0, %c0_i32_72 : i32
    %c27_i32_73 = arith.constant 27 : i32
    %207 = arith.muli %206, %c27_i32_73 : i32
    %c8_i32 = arith.constant 8 : i32
    %208 = arith.addi %207, %c8_i32 : i32
    %209 = arith.index_cast %208 : i32 to index
    %210 = memref.load %arg2[%209] : memref<162xf32, #tpu.memory_space<smem>>
    %211 = vector.broadcast %210 : f32 to vector<16x128xf32>
    %212 = arith.mulf %205, %211 : vector<16x128xf32>
    %213 = arith.addf %188, %212 : vector<16x128xf32>
    %c1_i32_74 = arith.constant 1 : i32
    %214 = arith.addi %0, %c1_i32_74 : i32
    %c27_i32_75 = arith.constant 27 : i32
    %215 = arith.muli %214, %c27_i32_75 : i32
    %c8_i32_76 = arith.constant 8 : i32
    %216 = arith.addi %215, %c8_i32_76 : i32
    %217 = arith.index_cast %216 : i32 to index
    %218 = memref.load %arg2[%217] : memref<162xf32, #tpu.memory_space<smem>>
    %219 = vector.broadcast %218 : f32 to vector<16x128xf32>
    %220 = arith.mulf %205, %219 : vector<16x128xf32>
    %221 = arith.addf %196, %220 : vector<16x128xf32>
    %c2_i32_77 = arith.constant 2 : i32
    %222 = arith.addi %0, %c2_i32_77 : i32
    %c27_i32_78 = arith.constant 27 : i32
    %223 = arith.muli %222, %c27_i32_78 : i32
    %c8_i32_79 = arith.constant 8 : i32
    %224 = arith.addi %223, %c8_i32_79 : i32
    %225 = arith.index_cast %224 : i32 to index
    %226 = memref.load %arg2[%225] : memref<162xf32, #tpu.memory_space<smem>>
    %227 = vector.broadcast %226 : f32 to vector<16x128xf32>
    %228 = arith.mulf %205, %227 : vector<16x128xf32>
    %229 = arith.addf %204, %228 : vector<16x128xf32>
    %c1 = arith.constant 1 : index
    %c0_80 = arith.constant 0 : index
    %c0_81 = arith.constant 0 : index
    %230 = vector.load %arg1[%c1, %c0_80, %c0_81] : memref<3x16x128xf32, #tpu.memory_space<vmem>>, vector<1x16x128xf32>
    %231 = vector.shape_cast %230 : vector<1x16x128xf32> to vector<16x128xf32>
    %c0_i32_82 = arith.constant 0 : i32
    %232 = arith.addi %0, %c0_i32_82 : i32
    %c27_i32_83 = arith.constant 27 : i32
    %233 = arith.muli %232, %c27_i32_83 : i32
    %c9_i32 = arith.constant 9 : i32
    %234 = arith.addi %233, %c9_i32 : i32
    %235 = arith.index_cast %234 : i32 to index
    %236 = memref.load %arg2[%235] : memref<162xf32, #tpu.memory_space<smem>>
    %237 = vector.broadcast %236 : f32 to vector<16x128xf32>
    %238 = arith.mulf %231, %237 : vector<16x128xf32>
    %239 = arith.addf %213, %238 : vector<16x128xf32>
    %c1_i32_84 = arith.constant 1 : i32
    %240 = arith.addi %0, %c1_i32_84 : i32
    %c27_i32_85 = arith.constant 27 : i32
    %241 = arith.muli %240, %c27_i32_85 : i32
    %c9_i32_86 = arith.constant 9 : i32
    %242 = arith.addi %241, %c9_i32_86 : i32
    %243 = arith.index_cast %242 : i32 to index
    %244 = memref.load %arg2[%243] : memref<162xf32, #tpu.memory_space<smem>>
    %245 = vector.broadcast %244 : f32 to vector<16x128xf32>
    %246 = arith.mulf %231, %245 : vector<16x128xf32>
    %247 = arith.addf %221, %246 : vector<16x128xf32>
    %c2_i32_87 = arith.constant 2 : i32
    %248 = arith.addi %0, %c2_i32_87 : i32
    %c27_i32_88 = arith.constant 27 : i32
    %249 = arith.muli %248, %c27_i32_88 : i32
    %c9_i32_89 = arith.constant 9 : i32
    %250 = arith.addi %249, %c9_i32_89 : i32
    %251 = arith.index_cast %250 : i32 to index
    %252 = memref.load %arg2[%251] : memref<162xf32, #tpu.memory_space<smem>>
    %253 = vector.broadcast %252 : f32 to vector<16x128xf32>
    %254 = arith.mulf %231, %253 : vector<16x128xf32>
    %255 = arith.addf %229, %254 : vector<16x128xf32>
    %c127_i32_90 = arith.constant 127 : i32
    %256 = tpu.dynamic_rotate %231 by %c127_i32_90 dim 1 : vector<16x128xf32>, i32 -> vector<16x128xf32>
    %c0_i32_91 = arith.constant 0 : i32
    %257 = arith.addi %0, %c0_i32_91 : i32
    %c27_i32_92 = arith.constant 27 : i32
    %258 = arith.muli %257, %c27_i32_92 : i32
    %c10_i32 = arith.constant 10 : i32
    %259 = arith.addi %258, %c10_i32 : i32
    %260 = arith.index_cast %259 : i32 to index
    %261 = memref.load %arg2[%260] : memref<162xf32, #tpu.memory_space<smem>>
    %262 = vector.broadcast %261 : f32 to vector<16x128xf32>
    %263 = arith.mulf %256, %262 : vector<16x128xf32>
    %264 = arith.addf %239, %263 : vector<16x128xf32>
    %c1_i32_93 = arith.constant 1 : i32
    %265 = arith.addi %0, %c1_i32_93 : i32
    %c27_i32_94 = arith.constant 27 : i32
    %266 = arith.muli %265, %c27_i32_94 : i32
    %c10_i32_95 = arith.constant 10 : i32
    %267 = arith.addi %266, %c10_i32_95 : i32
    %268 = arith.index_cast %267 : i32 to index
    %269 = memref.load %arg2[%268] : memref<162xf32, #tpu.memory_space<smem>>
    %270 = vector.broadcast %269 : f32 to vector<16x128xf32>
    %271 = arith.mulf %256, %270 : vector<16x128xf32>
    %272 = arith.addf %247, %271 : vector<16x128xf32>
    %c2_i32_96 = arith.constant 2 : i32
    %273 = arith.addi %0, %c2_i32_96 : i32
    %c27_i32_97 = arith.constant 27 : i32
    %274 = arith.muli %273, %c27_i32_97 : i32
    %c10_i32_98 = arith.constant 10 : i32
    %275 = arith.addi %274, %c10_i32_98 : i32
    %276 = arith.index_cast %275 : i32 to index
    %277 = memref.load %arg2[%276] : memref<162xf32, #tpu.memory_space<smem>>
    %278 = vector.broadcast %277 : f32 to vector<16x128xf32>
    %279 = arith.mulf %256, %278 : vector<16x128xf32>
    %280 = arith.addf %255, %279 : vector<16x128xf32>
    %c126_i32_99 = arith.constant 126 : i32
    %281 = tpu.dynamic_rotate %231 by %c126_i32_99 dim 1 : vector<16x128xf32>, i32 -> vector<16x128xf32>
    %c0_i32_100 = arith.constant 0 : i32
    %282 = arith.addi %0, %c0_i32_100 : i32
    %c27_i32_101 = arith.constant 27 : i32
    %283 = arith.muli %282, %c27_i32_101 : i32
    %c11_i32 = arith.constant 11 : i32
    %284 = arith.addi %283, %c11_i32 : i32
    %285 = arith.index_cast %284 : i32 to index
    %286 = memref.load %arg2[%285] : memref<162xf32, #tpu.memory_space<smem>>
    %287 = vector.broadcast %286 : f32 to vector<16x128xf32>
    %288 = arith.mulf %281, %287 : vector<16x128xf32>
    %289 = arith.addf %264, %288 : vector<16x128xf32>
    %c1_i32_102 = arith.constant 1 : i32
    %290 = arith.addi %0, %c1_i32_102 : i32
    %c27_i32_103 = arith.constant 27 : i32
    %291 = arith.muli %290, %c27_i32_103 : i32
    %c11_i32_104 = arith.constant 11 : i32
    %292 = arith.addi %291, %c11_i32_104 : i32
    %293 = arith.index_cast %292 : i32 to index
    %294 = memref.load %arg2[%293] : memref<162xf32, #tpu.memory_space<smem>>
    %295 = vector.broadcast %294 : f32 to vector<16x128xf32>
    %296 = arith.mulf %281, %295 : vector<16x128xf32>
    %297 = arith.addf %272, %296 : vector<16x128xf32>
    %c2_i32_105 = arith.constant 2 : i32
    %298 = arith.addi %0, %c2_i32_105 : i32
    %c27_i32_106 = arith.constant 27 : i32
    %299 = arith.muli %298, %c27_i32_106 : i32
    %c11_i32_107 = arith.constant 11 : i32
    %300 = arith.addi %299, %c11_i32_107 : i32
    %301 = arith.index_cast %300 : i32 to index
    %302 = memref.load %arg2[%301] : memref<162xf32, #tpu.memory_space<smem>>
    %303 = vector.broadcast %302 : f32 to vector<16x128xf32>
    %304 = arith.mulf %281, %303 : vector<16x128xf32>
    %305 = arith.addf %280, %304 : vector<16x128xf32>
    %c15_i32_108 = arith.constant 15 : i32
    %306 = tpu.dynamic_rotate %231 by %c15_i32_108 dim 0 : vector<16x128xf32>, i32 -> vector<16x128xf32>
    %c0_i32_109 = arith.constant 0 : i32
    %307 = arith.addi %0, %c0_i32_109 : i32
    %c27_i32_110 = arith.constant 27 : i32
    %308 = arith.muli %307, %c27_i32_110 : i32
    %c12_i32 = arith.constant 12 : i32
    %309 = arith.addi %308, %c12_i32 : i32
    %310 = arith.index_cast %309 : i32 to index
    %311 = memref.load %arg2[%310] : memref<162xf32, #tpu.memory_space<smem>>
    %312 = vector.broadcast %311 : f32 to vector<16x128xf32>
    %313 = arith.mulf %306, %312 : vector<16x128xf32>
    %314 = arith.addf %289, %313 : vector<16x128xf32>
    %c1_i32_111 = arith.constant 1 : i32
    %315 = arith.addi %0, %c1_i32_111 : i32
    %c27_i32_112 = arith.constant 27 : i32
    %316 = arith.muli %315, %c27_i32_112 : i32
    %c12_i32_113 = arith.constant 12 : i32
    %317 = arith.addi %316, %c12_i32_113 : i32
    %318 = arith.index_cast %317 : i32 to index
    %319 = memref.load %arg2[%318] : memref<162xf32, #tpu.memory_space<smem>>
    %320 = vector.broadcast %319 : f32 to vector<16x128xf32>
    %321 = arith.mulf %306, %320 : vector<16x128xf32>
    %322 = arith.addf %297, %321 : vector<16x128xf32>
    %c2_i32_114 = arith.constant 2 : i32
    %323 = arith.addi %0, %c2_i32_114 : i32
    %c27_i32_115 = arith.constant 27 : i32
    %324 = arith.muli %323, %c27_i32_115 : i32
    %c12_i32_116 = arith.constant 12 : i32
    %325 = arith.addi %324, %c12_i32_116 : i32
    %326 = arith.index_cast %325 : i32 to index
    %327 = memref.load %arg2[%326] : memref<162xf32, #tpu.memory_space<smem>>
    %328 = vector.broadcast %327 : f32 to vector<16x128xf32>
    %329 = arith.mulf %306, %328 : vector<16x128xf32>
    %330 = arith.addf %305, %329 : vector<16x128xf32>
    %c127_i32_117 = arith.constant 127 : i32
    %331 = tpu.dynamic_rotate %306 by %c127_i32_117 dim 1 : vector<16x128xf32>, i32 -> vector<16x128xf32>
    %c0_i32_118 = arith.constant 0 : i32
    %332 = arith.addi %0, %c0_i32_118 : i32
    %c27_i32_119 = arith.constant 27 : i32
    %333 = arith.muli %332, %c27_i32_119 : i32
    %c13_i32 = arith.constant 13 : i32
    %334 = arith.addi %333, %c13_i32 : i32
    %335 = arith.index_cast %334 : i32 to index
    %336 = memref.load %arg2[%335] : memref<162xf32, #tpu.memory_space<smem>>
    %337 = vector.broadcast %336 : f32 to vector<16x128xf32>
    %338 = arith.mulf %331, %337 : vector<16x128xf32>
    %339 = arith.addf %314, %338 : vector<16x128xf32>
    %c1_i32_120 = arith.constant 1 : i32
    %340 = arith.addi %0, %c1_i32_120 : i32
    %c27_i32_121 = arith.constant 27 : i32
    %341 = arith.muli %340, %c27_i32_121 : i32
    %c13_i32_122 = arith.constant 13 : i32
    %342 = arith.addi %341, %c13_i32_122 : i32
    %343 = arith.index_cast %342 : i32 to index
    %344 = memref.load %arg2[%343] : memref<162xf32, #tpu.memory_space<smem>>
    %345 = vector.broadcast %344 : f32 to vector<16x128xf32>
    %346 = arith.mulf %331, %345 : vector<16x128xf32>
    %347 = arith.addf %322, %346 : vector<16x128xf32>
    %c2_i32_123 = arith.constant 2 : i32
    %348 = arith.addi %0, %c2_i32_123 : i32
    %c27_i32_124 = arith.constant 27 : i32
    %349 = arith.muli %348, %c27_i32_124 : i32
    %c13_i32_125 = arith.constant 13 : i32
    %350 = arith.addi %349, %c13_i32_125 : i32
    %351 = arith.index_cast %350 : i32 to index
    %352 = memref.load %arg2[%351] : memref<162xf32, #tpu.memory_space<smem>>
    %353 = vector.broadcast %352 : f32 to vector<16x128xf32>
    %354 = arith.mulf %331, %353 : vector<16x128xf32>
    %355 = arith.addf %330, %354 : vector<16x128xf32>
    %c126_i32_126 = arith.constant 126 : i32
    %356 = tpu.dynamic_rotate %306 by %c126_i32_126 dim 1 : vector<16x128xf32>, i32 -> vector<16x128xf32>
    %c0_i32_127 = arith.constant 0 : i32
    %357 = arith.addi %0, %c0_i32_127 : i32
    %c27_i32_128 = arith.constant 27 : i32
    %358 = arith.muli %357, %c27_i32_128 : i32
    %c14_i32_129 = arith.constant 14 : i32
    %359 = arith.addi %358, %c14_i32_129 : i32
    %360 = arith.index_cast %359 : i32 to index
    %361 = memref.load %arg2[%360] : memref<162xf32, #tpu.memory_space<smem>>
    %362 = vector.broadcast %361 : f32 to vector<16x128xf32>
    %363 = arith.mulf %356, %362 : vector<16x128xf32>
    %364 = arith.addf %339, %363 : vector<16x128xf32>
    %c1_i32_130 = arith.constant 1 : i32
    %365 = arith.addi %0, %c1_i32_130 : i32
    %c27_i32_131 = arith.constant 27 : i32
    %366 = arith.muli %365, %c27_i32_131 : i32
    %c14_i32_132 = arith.constant 14 : i32
    %367 = arith.addi %366, %c14_i32_132 : i32
    %368 = arith.index_cast %367 : i32 to index
    %369 = memref.load %arg2[%368] : memref<162xf32, #tpu.memory_space<smem>>
    %370 = vector.broadcast %369 : f32 to vector<16x128xf32>
    %371 = arith.mulf %356, %370 : vector<16x128xf32>
    %372 = arith.addf %347, %371 : vector<16x128xf32>
    %c2_i32_133 = arith.constant 2 : i32
    %373 = arith.addi %0, %c2_i32_133 : i32
    %c27_i32_134 = arith.constant 27 : i32
    %374 = arith.muli %373, %c27_i32_134 : i32
    %c14_i32_135 = arith.constant 14 : i32
    %375 = arith.addi %374, %c14_i32_135 : i32
    %376 = arith.index_cast %375 : i32 to index
    %377 = memref.load %arg2[%376] : memref<162xf32, #tpu.memory_space<smem>>
    %378 = vector.broadcast %377 : f32 to vector<16x128xf32>
    %379 = arith.mulf %356, %378 : vector<16x128xf32>
    %380 = arith.addf %355, %379 : vector<16x128xf32>
    %c14_i32_136 = arith.constant 14 : i32
    %381 = tpu.dynamic_rotate %231 by %c14_i32_136 dim 0 : vector<16x128xf32>, i32 -> vector<16x128xf32>
    %c0_i32_137 = arith.constant 0 : i32
    %382 = arith.addi %0, %c0_i32_137 : i32
    %c27_i32_138 = arith.constant 27 : i32
    %383 = arith.muli %382, %c27_i32_138 : i32
    %c15_i32_139 = arith.constant 15 : i32
    %384 = arith.addi %383, %c15_i32_139 : i32
    %385 = arith.index_cast %384 : i32 to index
    %386 = memref.load %arg2[%385] : memref<162xf32, #tpu.memory_space<smem>>
    %387 = vector.broadcast %386 : f32 to vector<16x128xf32>
    %388 = arith.mulf %381, %387 : vector<16x128xf32>
    %389 = arith.addf %364, %388 : vector<16x128xf32>
    %c1_i32_140 = arith.constant 1 : i32
    %390 = arith.addi %0, %c1_i32_140 : i32
    %c27_i32_141 = arith.constant 27 : i32
    %391 = arith.muli %390, %c27_i32_141 : i32
    %c15_i32_142 = arith.constant 15 : i32
    %392 = arith.addi %391, %c15_i32_142 : i32
    %393 = arith.index_cast %392 : i32 to index
    %394 = memref.load %arg2[%393] : memref<162xf32, #tpu.memory_space<smem>>
    %395 = vector.broadcast %394 : f32 to vector<16x128xf32>
    %396 = arith.mulf %381, %395 : vector<16x128xf32>
    %397 = arith.addf %372, %396 : vector<16x128xf32>
    %c2_i32_143 = arith.constant 2 : i32
    %398 = arith.addi %0, %c2_i32_143 : i32
    %c27_i32_144 = arith.constant 27 : i32
    %399 = arith.muli %398, %c27_i32_144 : i32
    %c15_i32_145 = arith.constant 15 : i32
    %400 = arith.addi %399, %c15_i32_145 : i32
    %401 = arith.index_cast %400 : i32 to index
    %402 = memref.load %arg2[%401] : memref<162xf32, #tpu.memory_space<smem>>
    %403 = vector.broadcast %402 : f32 to vector<16x128xf32>
    %404 = arith.mulf %381, %403 : vector<16x128xf32>
    %405 = arith.addf %380, %404 : vector<16x128xf32>
    %c127_i32_146 = arith.constant 127 : i32
    %406 = tpu.dynamic_rotate %381 by %c127_i32_146 dim 1 : vector<16x128xf32>, i32 -> vector<16x128xf32>
    %c0_i32_147 = arith.constant 0 : i32
    %407 = arith.addi %0, %c0_i32_147 : i32
    %c27_i32_148 = arith.constant 27 : i32
    %408 = arith.muli %407, %c27_i32_148 : i32
    %c16_i32 = arith.constant 16 : i32
    %409 = arith.addi %408, %c16_i32 : i32
    %410 = arith.index_cast %409 : i32 to index
    %411 = memref.load %arg2[%410] : memref<162xf32, #tpu.memory_space<smem>>
    %412 = vector.broadcast %411 : f32 to vector<16x128xf32>
    %413 = arith.mulf %406, %412 : vector<16x128xf32>
    %414 = arith.addf %389, %413 : vector<16x128xf32>
    %c1_i32_149 = arith.constant 1 : i32
    %415 = arith.addi %0, %c1_i32_149 : i32
    %c27_i32_150 = arith.constant 27 : i32
    %416 = arith.muli %415, %c27_i32_150 : i32
    %c16_i32_151 = arith.constant 16 : i32
    %417 = arith.addi %416, %c16_i32_151 : i32
    %418 = arith.index_cast %417 : i32 to index
    %419 = memref.load %arg2[%418] : memref<162xf32, #tpu.memory_space<smem>>
    %420 = vector.broadcast %419 : f32 to vector<16x128xf32>
    %421 = arith.mulf %406, %420 : vector<16x128xf32>
    %422 = arith.addf %397, %421 : vector<16x128xf32>
    %c2_i32_152 = arith.constant 2 : i32
    %423 = arith.addi %0, %c2_i32_152 : i32
    %c27_i32_153 = arith.constant 27 : i32
    %424 = arith.muli %423, %c27_i32_153 : i32
    %c16_i32_154 = arith.constant 16 : i32
    %425 = arith.addi %424, %c16_i32_154 : i32
    %426 = arith.index_cast %425 : i32 to index
    %427 = memref.load %arg2[%426] : memref<162xf32, #tpu.memory_space<smem>>
    %428 = vector.broadcast %427 : f32 to vector<16x128xf32>
    %429 = arith.mulf %406, %428 : vector<16x128xf32>
    %430 = arith.addf %405, %429 : vector<16x128xf32>
    %c126_i32_155 = arith.constant 126 : i32
    %431 = tpu.dynamic_rotate %381 by %c126_i32_155 dim 1 : vector<16x128xf32>, i32 -> vector<16x128xf32>
    %c0_i32_156 = arith.constant 0 : i32
    %432 = arith.addi %0, %c0_i32_156 : i32
    %c27_i32_157 = arith.constant 27 : i32
    %433 = arith.muli %432, %c27_i32_157 : i32
    %c17_i32 = arith.constant 17 : i32
    %434 = arith.addi %433, %c17_i32 : i32
    %435 = arith.index_cast %434 : i32 to index
    %436 = memref.load %arg2[%435] : memref<162xf32, #tpu.memory_space<smem>>
    %437 = vector.broadcast %436 : f32 to vector<16x128xf32>
    %438 = arith.mulf %431, %437 : vector<16x128xf32>
    %439 = arith.addf %414, %438 : vector<16x128xf32>
    %c1_i32_158 = arith.constant 1 : i32
    %440 = arith.addi %0, %c1_i32_158 : i32
    %c27_i32_159 = arith.constant 27 : i32
    %441 = arith.muli %440, %c27_i32_159 : i32
    %c17_i32_160 = arith.constant 17 : i32
    %442 = arith.addi %441, %c17_i32_160 : i32
    %443 = arith.index_cast %442 : i32 to index
    %444 = memref.load %arg2[%443] : memref<162xf32, #tpu.memory_space<smem>>
    %445 = vector.broadcast %444 : f32 to vector<16x128xf32>
    %446 = arith.mulf %431, %445 : vector<16x128xf32>
    %447 = arith.addf %422, %446 : vector<16x128xf32>
    %c2_i32_161 = arith.constant 2 : i32
    %448 = arith.addi %0, %c2_i32_161 : i32
    %c27_i32_162 = arith.constant 27 : i32
    %449 = arith.muli %448, %c27_i32_162 : i32
    %c17_i32_163 = arith.constant 17 : i32
    %450 = arith.addi %449, %c17_i32_163 : i32
    %451 = arith.index_cast %450 : i32 to index
    %452 = memref.load %arg2[%451] : memref<162xf32, #tpu.memory_space<smem>>
    %453 = vector.broadcast %452 : f32 to vector<16x128xf32>
    %454 = arith.mulf %431, %453 : vector<16x128xf32>
    %455 = arith.addf %430, %454 : vector<16x128xf32>
    %c2 = arith.constant 2 : index
    %c0_164 = arith.constant 0 : index
    %c0_165 = arith.constant 0 : index
    %456 = vector.load %arg1[%c2, %c0_164, %c0_165] : memref<3x16x128xf32, #tpu.memory_space<vmem>>, vector<1x16x128xf32>
    %457 = vector.shape_cast %456 : vector<1x16x128xf32> to vector<16x128xf32>
    %c0_i32_166 = arith.constant 0 : i32
    %458 = arith.addi %0, %c0_i32_166 : i32
    %c27_i32_167 = arith.constant 27 : i32
    %459 = arith.muli %458, %c27_i32_167 : i32
    %c18_i32 = arith.constant 18 : i32
    %460 = arith.addi %459, %c18_i32 : i32
    %461 = arith.index_cast %460 : i32 to index
    %462 = memref.load %arg2[%461] : memref<162xf32, #tpu.memory_space<smem>>
    %463 = vector.broadcast %462 : f32 to vector<16x128xf32>
    %464 = arith.mulf %457, %463 : vector<16x128xf32>
    %465 = arith.addf %439, %464 : vector<16x128xf32>
    %c1_i32_168 = arith.constant 1 : i32
    %466 = arith.addi %0, %c1_i32_168 : i32
    %c27_i32_169 = arith.constant 27 : i32
    %467 = arith.muli %466, %c27_i32_169 : i32
    %c18_i32_170 = arith.constant 18 : i32
    %468 = arith.addi %467, %c18_i32_170 : i32
    %469 = arith.index_cast %468 : i32 to index
    %470 = memref.load %arg2[%469] : memref<162xf32, #tpu.memory_space<smem>>
    %471 = vector.broadcast %470 : f32 to vector<16x128xf32>
    %472 = arith.mulf %457, %471 : vector<16x128xf32>
    %473 = arith.addf %447, %472 : vector<16x128xf32>
    %c2_i32_171 = arith.constant 2 : i32
    %474 = arith.addi %0, %c2_i32_171 : i32
    %c27_i32_172 = arith.constant 27 : i32
    %475 = arith.muli %474, %c27_i32_172 : i32
    %c18_i32_173 = arith.constant 18 : i32
    %476 = arith.addi %475, %c18_i32_173 : i32
    %477 = arith.index_cast %476 : i32 to index
    %478 = memref.load %arg2[%477] : memref<162xf32, #tpu.memory_space<smem>>
    %479 = vector.broadcast %478 : f32 to vector<16x128xf32>
    %480 = arith.mulf %457, %479 : vector<16x128xf32>
    %481 = arith.addf %455, %480 : vector<16x128xf32>
    %c127_i32_174 = arith.constant 127 : i32
    %482 = tpu.dynamic_rotate %457 by %c127_i32_174 dim 1 : vector<16x128xf32>, i32 -> vector<16x128xf32>
    %c0_i32_175 = arith.constant 0 : i32
    %483 = arith.addi %0, %c0_i32_175 : i32
    %c27_i32_176 = arith.constant 27 : i32
    %484 = arith.muli %483, %c27_i32_176 : i32
    %c19_i32 = arith.constant 19 : i32
    %485 = arith.addi %484, %c19_i32 : i32
    %486 = arith.index_cast %485 : i32 to index
    %487 = memref.load %arg2[%486] : memref<162xf32, #tpu.memory_space<smem>>
    %488 = vector.broadcast %487 : f32 to vector<16x128xf32>
    %489 = arith.mulf %482, %488 : vector<16x128xf32>
    %490 = arith.addf %465, %489 : vector<16x128xf32>
    %c1_i32_177 = arith.constant 1 : i32
    %491 = arith.addi %0, %c1_i32_177 : i32
    %c27_i32_178 = arith.constant 27 : i32
    %492 = arith.muli %491, %c27_i32_178 : i32
    %c19_i32_179 = arith.constant 19 : i32
    %493 = arith.addi %492, %c19_i32_179 : i32
    %494 = arith.index_cast %493 : i32 to index
    %495 = memref.load %arg2[%494] : memref<162xf32, #tpu.memory_space<smem>>
    %496 = vector.broadcast %495 : f32 to vector<16x128xf32>
    %497 = arith.mulf %482, %496 : vector<16x128xf32>
    %498 = arith.addf %473, %497 : vector<16x128xf32>
    %c2_i32_180 = arith.constant 2 : i32
    %499 = arith.addi %0, %c2_i32_180 : i32
    %c27_i32_181 = arith.constant 27 : i32
    %500 = arith.muli %499, %c27_i32_181 : i32
    %c19_i32_182 = arith.constant 19 : i32
    %501 = arith.addi %500, %c19_i32_182 : i32
    %502 = arith.index_cast %501 : i32 to index
    %503 = memref.load %arg2[%502] : memref<162xf32, #tpu.memory_space<smem>>
    %504 = vector.broadcast %503 : f32 to vector<16x128xf32>
    %505 = arith.mulf %482, %504 : vector<16x128xf32>
    %506 = arith.addf %481, %505 : vector<16x128xf32>
    %c126_i32_183 = arith.constant 126 : i32
    %507 = tpu.dynamic_rotate %457 by %c126_i32_183 dim 1 : vector<16x128xf32>, i32 -> vector<16x128xf32>
    %c0_i32_184 = arith.constant 0 : i32
    %508 = arith.addi %0, %c0_i32_184 : i32
    %c27_i32_185 = arith.constant 27 : i32
    %509 = arith.muli %508, %c27_i32_185 : i32
    %c20_i32 = arith.constant 20 : i32
    %510 = arith.addi %509, %c20_i32 : i32
    %511 = arith.index_cast %510 : i32 to index
    %512 = memref.load %arg2[%511] : memref<162xf32, #tpu.memory_space<smem>>
    %513 = vector.broadcast %512 : f32 to vector<16x128xf32>
    %514 = arith.mulf %507, %513 : vector<16x128xf32>
    %515 = arith.addf %490, %514 : vector<16x128xf32>
    %c1_i32_186 = arith.constant 1 : i32
    %516 = arith.addi %0, %c1_i32_186 : i32
    %c27_i32_187 = arith.constant 27 : i32
    %517 = arith.muli %516, %c27_i32_187 : i32
    %c20_i32_188 = arith.constant 20 : i32
    %518 = arith.addi %517, %c20_i32_188 : i32
    %519 = arith.index_cast %518 : i32 to index
    %520 = memref.load %arg2[%519] : memref<162xf32, #tpu.memory_space<smem>>
    %521 = vector.broadcast %520 : f32 to vector<16x128xf32>
    %522 = arith.mulf %507, %521 : vector<16x128xf32>
    %523 = arith.addf %498, %522 : vector<16x128xf32>
    %c2_i32_189 = arith.constant 2 : i32
    %524 = arith.addi %0, %c2_i32_189 : i32
    %c27_i32_190 = arith.constant 27 : i32
    %525 = arith.muli %524, %c27_i32_190 : i32
    %c20_i32_191 = arith.constant 20 : i32
    %526 = arith.addi %525, %c20_i32_191 : i32
    %527 = arith.index_cast %526 : i32 to index
    %528 = memref.load %arg2[%527] : memref<162xf32, #tpu.memory_space<smem>>
    %529 = vector.broadcast %528 : f32 to vector<16x128xf32>
    %530 = arith.mulf %507, %529 : vector<16x128xf32>
    %531 = arith.addf %506, %530 : vector<16x128xf32>
    %c15_i32_192 = arith.constant 15 : i32
    %532 = tpu.dynamic_rotate %457 by %c15_i32_192 dim 0 : vector<16x128xf32>, i32 -> vector<16x128xf32>
    %c0_i32_193 = arith.constant 0 : i32
    %533 = arith.addi %0, %c0_i32_193 : i32
    %c27_i32_194 = arith.constant 27 : i32
    %534 = arith.muli %533, %c27_i32_194 : i32
    %c21_i32 = arith.constant 21 : i32
    %535 = arith.addi %534, %c21_i32 : i32
    %536 = arith.index_cast %535 : i32 to index
    %537 = memref.load %arg2[%536] : memref<162xf32, #tpu.memory_space<smem>>
    %538 = vector.broadcast %537 : f32 to vector<16x128xf32>
    %539 = arith.mulf %532, %538 : vector<16x128xf32>
    %540 = arith.addf %515, %539 : vector<16x128xf32>
    %c1_i32_195 = arith.constant 1 : i32
    %541 = arith.addi %0, %c1_i32_195 : i32
    %c27_i32_196 = arith.constant 27 : i32
    %542 = arith.muli %541, %c27_i32_196 : i32
    %c21_i32_197 = arith.constant 21 : i32
    %543 = arith.addi %542, %c21_i32_197 : i32
    %544 = arith.index_cast %543 : i32 to index
    %545 = memref.load %arg2[%544] : memref<162xf32, #tpu.memory_space<smem>>
    %546 = vector.broadcast %545 : f32 to vector<16x128xf32>
    %547 = arith.mulf %532, %546 : vector<16x128xf32>
    %548 = arith.addf %523, %547 : vector<16x128xf32>
    %c2_i32_198 = arith.constant 2 : i32
    %549 = arith.addi %0, %c2_i32_198 : i32
    %c27_i32_199 = arith.constant 27 : i32
    %550 = arith.muli %549, %c27_i32_199 : i32
    %c21_i32_200 = arith.constant 21 : i32
    %551 = arith.addi %550, %c21_i32_200 : i32
    %552 = arith.index_cast %551 : i32 to index
    %553 = memref.load %arg2[%552] : memref<162xf32, #tpu.memory_space<smem>>
    %554 = vector.broadcast %553 : f32 to vector<16x128xf32>
    %555 = arith.mulf %532, %554 : vector<16x128xf32>
    %556 = arith.addf %531, %555 : vector<16x128xf32>
    %c127_i32_201 = arith.constant 127 : i32
    %557 = tpu.dynamic_rotate %532 by %c127_i32_201 dim 1 : vector<16x128xf32>, i32 -> vector<16x128xf32>
    %c0_i32_202 = arith.constant 0 : i32
    %558 = arith.addi %0, %c0_i32_202 : i32
    %c27_i32_203 = arith.constant 27 : i32
    %559 = arith.muli %558, %c27_i32_203 : i32
    %c22_i32 = arith.constant 22 : i32
    %560 = arith.addi %559, %c22_i32 : i32
    %561 = arith.index_cast %560 : i32 to index
    %562 = memref.load %arg2[%561] : memref<162xf32, #tpu.memory_space<smem>>
    %563 = vector.broadcast %562 : f32 to vector<16x128xf32>
    %564 = arith.mulf %557, %563 : vector<16x128xf32>
    %565 = arith.addf %540, %564 : vector<16x128xf32>
    %c1_i32_204 = arith.constant 1 : i32
    %566 = arith.addi %0, %c1_i32_204 : i32
    %c27_i32_205 = arith.constant 27 : i32
    %567 = arith.muli %566, %c27_i32_205 : i32
    %c22_i32_206 = arith.constant 22 : i32
    %568 = arith.addi %567, %c22_i32_206 : i32
    %569 = arith.index_cast %568 : i32 to index
    %570 = memref.load %arg2[%569] : memref<162xf32, #tpu.memory_space<smem>>
    %571 = vector.broadcast %570 : f32 to vector<16x128xf32>
    %572 = arith.mulf %557, %571 : vector<16x128xf32>
    %573 = arith.addf %548, %572 : vector<16x128xf32>
    %c2_i32_207 = arith.constant 2 : i32
    %574 = arith.addi %0, %c2_i32_207 : i32
    %c27_i32_208 = arith.constant 27 : i32
    %575 = arith.muli %574, %c27_i32_208 : i32
    %c22_i32_209 = arith.constant 22 : i32
    %576 = arith.addi %575, %c22_i32_209 : i32
    %577 = arith.index_cast %576 : i32 to index
    %578 = memref.load %arg2[%577] : memref<162xf32, #tpu.memory_space<smem>>
    %579 = vector.broadcast %578 : f32 to vector<16x128xf32>
    %580 = arith.mulf %557, %579 : vector<16x128xf32>
    %581 = arith.addf %556, %580 : vector<16x128xf32>
    %c126_i32_210 = arith.constant 126 : i32
    %582 = tpu.dynamic_rotate %532 by %c126_i32_210 dim 1 : vector<16x128xf32>, i32 -> vector<16x128xf32>
    %c0_i32_211 = arith.constant 0 : i32
    %583 = arith.addi %0, %c0_i32_211 : i32
    %c27_i32_212 = arith.constant 27 : i32
    %584 = arith.muli %583, %c27_i32_212 : i32
    %c23_i32 = arith.constant 23 : i32
    %585 = arith.addi %584, %c23_i32 : i32
    %586 = arith.index_cast %585 : i32 to index
    %587 = memref.load %arg2[%586] : memref<162xf32, #tpu.memory_space<smem>>
    %588 = vector.broadcast %587 : f32 to vector<16x128xf32>
    %589 = arith.mulf %582, %588 : vector<16x128xf32>
    %590 = arith.addf %565, %589 : vector<16x128xf32>
    %c1_i32_213 = arith.constant 1 : i32
    %591 = arith.addi %0, %c1_i32_213 : i32
    %c27_i32_214 = arith.constant 27 : i32
    %592 = arith.muli %591, %c27_i32_214 : i32
    %c23_i32_215 = arith.constant 23 : i32
    %593 = arith.addi %592, %c23_i32_215 : i32
    %594 = arith.index_cast %593 : i32 to index
    %595 = memref.load %arg2[%594] : memref<162xf32, #tpu.memory_space<smem>>
    %596 = vector.broadcast %595 : f32 to vector<16x128xf32>
    %597 = arith.mulf %582, %596 : vector<16x128xf32>
    %598 = arith.addf %573, %597 : vector<16x128xf32>
    %c2_i32_216 = arith.constant 2 : i32
    %599 = arith.addi %0, %c2_i32_216 : i32
    %c27_i32_217 = arith.constant 27 : i32
    %600 = arith.muli %599, %c27_i32_217 : i32
    %c23_i32_218 = arith.constant 23 : i32
    %601 = arith.addi %600, %c23_i32_218 : i32
    %602 = arith.index_cast %601 : i32 to index
    %603 = memref.load %arg2[%602] : memref<162xf32, #tpu.memory_space<smem>>
    %604 = vector.broadcast %603 : f32 to vector<16x128xf32>
    %605 = arith.mulf %582, %604 : vector<16x128xf32>
    %606 = arith.addf %581, %605 : vector<16x128xf32>
    %c14_i32_219 = arith.constant 14 : i32
    %607 = tpu.dynamic_rotate %457 by %c14_i32_219 dim 0 : vector<16x128xf32>, i32 -> vector<16x128xf32>
    %c0_i32_220 = arith.constant 0 : i32
    %608 = arith.addi %0, %c0_i32_220 : i32
    %c27_i32_221 = arith.constant 27 : i32
    %609 = arith.muli %608, %c27_i32_221 : i32
    %c24_i32 = arith.constant 24 : i32
    %610 = arith.addi %609, %c24_i32 : i32
    %611 = arith.index_cast %610 : i32 to index
    %612 = memref.load %arg2[%611] : memref<162xf32, #tpu.memory_space<smem>>
    %613 = vector.broadcast %612 : f32 to vector<16x128xf32>
    %614 = arith.mulf %607, %613 : vector<16x128xf32>
    %615 = arith.addf %590, %614 : vector<16x128xf32>
    %c1_i32_222 = arith.constant 1 : i32
    %616 = arith.addi %0, %c1_i32_222 : i32
    %c27_i32_223 = arith.constant 27 : i32
    %617 = arith.muli %616, %c27_i32_223 : i32
    %c24_i32_224 = arith.constant 24 : i32
    %618 = arith.addi %617, %c24_i32_224 : i32
    %619 = arith.index_cast %618 : i32 to index
    %620 = memref.load %arg2[%619] : memref<162xf32, #tpu.memory_space<smem>>
    %621 = vector.broadcast %620 : f32 to vector<16x128xf32>
    %622 = arith.mulf %607, %621 : vector<16x128xf32>
    %623 = arith.addf %598, %622 : vector<16x128xf32>
    %c2_i32_225 = arith.constant 2 : i32
    %624 = arith.addi %0, %c2_i32_225 : i32
    %c27_i32_226 = arith.constant 27 : i32
    %625 = arith.muli %624, %c27_i32_226 : i32
    %c24_i32_227 = arith.constant 24 : i32
    %626 = arith.addi %625, %c24_i32_227 : i32
    %627 = arith.index_cast %626 : i32 to index
    %628 = memref.load %arg2[%627] : memref<162xf32, #tpu.memory_space<smem>>
    %629 = vector.broadcast %628 : f32 to vector<16x128xf32>
    %630 = arith.mulf %607, %629 : vector<16x128xf32>
    %631 = arith.addf %606, %630 : vector<16x128xf32>
    %c127_i32_228 = arith.constant 127 : i32
    %632 = tpu.dynamic_rotate %607 by %c127_i32_228 dim 1 : vector<16x128xf32>, i32 -> vector<16x128xf32>
    %c0_i32_229 = arith.constant 0 : i32
    %633 = arith.addi %0, %c0_i32_229 : i32
    %c27_i32_230 = arith.constant 27 : i32
    %634 = arith.muli %633, %c27_i32_230 : i32
    %c25_i32 = arith.constant 25 : i32
    %635 = arith.addi %634, %c25_i32 : i32
    %636 = arith.index_cast %635 : i32 to index
    %637 = memref.load %arg2[%636] : memref<162xf32, #tpu.memory_space<smem>>
    %638 = vector.broadcast %637 : f32 to vector<16x128xf32>
    %639 = arith.mulf %632, %638 : vector<16x128xf32>
    %640 = arith.addf %615, %639 : vector<16x128xf32>
    %c1_i32_231 = arith.constant 1 : i32
    %641 = arith.addi %0, %c1_i32_231 : i32
    %c27_i32_232 = arith.constant 27 : i32
    %642 = arith.muli %641, %c27_i32_232 : i32
    %c25_i32_233 = arith.constant 25 : i32
    %643 = arith.addi %642, %c25_i32_233 : i32
    %644 = arith.index_cast %643 : i32 to index
    %645 = memref.load %arg2[%644] : memref<162xf32, #tpu.memory_space<smem>>
    %646 = vector.broadcast %645 : f32 to vector<16x128xf32>
    %647 = arith.mulf %632, %646 : vector<16x128xf32>
    %648 = arith.addf %623, %647 : vector<16x128xf32>
    %c2_i32_234 = arith.constant 2 : i32
    %649 = arith.addi %0, %c2_i32_234 : i32
    %c27_i32_235 = arith.constant 27 : i32
    %650 = arith.muli %649, %c27_i32_235 : i32
    %c25_i32_236 = arith.constant 25 : i32
    %651 = arith.addi %650, %c25_i32_236 : i32
    %652 = arith.index_cast %651 : i32 to index
    %653 = memref.load %arg2[%652] : memref<162xf32, #tpu.memory_space<smem>>
    %654 = vector.broadcast %653 : f32 to vector<16x128xf32>
    %655 = arith.mulf %632, %654 : vector<16x128xf32>
    %656 = arith.addf %631, %655 : vector<16x128xf32>
    %c126_i32_237 = arith.constant 126 : i32
    %657 = tpu.dynamic_rotate %607 by %c126_i32_237 dim 1 : vector<16x128xf32>, i32 -> vector<16x128xf32>
    %c0_i32_238 = arith.constant 0 : i32
    %658 = arith.addi %0, %c0_i32_238 : i32
    %c27_i32_239 = arith.constant 27 : i32
    %659 = arith.muli %658, %c27_i32_239 : i32
    %c26_i32 = arith.constant 26 : i32
    %660 = arith.addi %659, %c26_i32 : i32
    %661 = arith.index_cast %660 : i32 to index
    %662 = memref.load %arg2[%661] : memref<162xf32, #tpu.memory_space<smem>>
    %663 = vector.broadcast %662 : f32 to vector<16x128xf32>
    %664 = arith.mulf %657, %663 : vector<16x128xf32>
    %665 = arith.addf %640, %664 : vector<16x128xf32>
    %c1_i32_240 = arith.constant 1 : i32
    %666 = arith.addi %0, %c1_i32_240 : i32
    %c27_i32_241 = arith.constant 27 : i32
    %667 = arith.muli %666, %c27_i32_241 : i32
    %c26_i32_242 = arith.constant 26 : i32
    %668 = arith.addi %667, %c26_i32_242 : i32
    %669 = arith.index_cast %668 : i32 to index
    %670 = memref.load %arg2[%669] : memref<162xf32, #tpu.memory_space<smem>>
    %671 = vector.broadcast %670 : f32 to vector<16x128xf32>
    %672 = arith.mulf %657, %671 : vector<16x128xf32>
    %673 = arith.addf %648, %672 : vector<16x128xf32>
    %c2_i32_243 = arith.constant 2 : i32
    %674 = arith.addi %0, %c2_i32_243 : i32
    %c27_i32_244 = arith.constant 27 : i32
    %675 = arith.muli %674, %c27_i32_244 : i32
    %c26_i32_245 = arith.constant 26 : i32
    %676 = arith.addi %675, %c26_i32_245 : i32
    %677 = arith.index_cast %676 : i32 to index
    %678 = memref.load %arg2[%677] : memref<162xf32, #tpu.memory_space<smem>>
    %679 = vector.broadcast %678 : f32 to vector<16x128xf32>
    %680 = arith.mulf %657, %679 : vector<16x128xf32>
    %681 = arith.addf %656, %680 : vector<16x128xf32>
    %682 = vector.extract_strided_slice %665 {offsets = [0, 0], sizes = [14, 128], strides = [1, 1]} : vector<16x128xf32> to vector<14x128xf32>
    %c0_i32_246 = arith.constant 0 : i32
    %683 = arith.addi %0, %c0_i32_246 : i32
    %684 = arith.index_cast %683 : i32 to index
    %685 = memref.load %arg3[%684] : memref<6xf32, #tpu.memory_space<smem>>
    %686 = vector.broadcast %685 : f32 to vector<14x128xf32>
    %687 = arith.addf %682, %686 : vector<14x128xf32>
    %c0_247 = arith.constant 0 : index
    %c0_248 = arith.constant 0 : index
    %c0_249 = arith.constant 0 : index
    %688 = vector.load %arg4[%c0_247, %c0_248, %c0_249] : memref<3x14x128xf32, #tpu.memory_space<vmem>>, vector<1x14x128xf32>
    %689 = vector.shape_cast %688 : vector<1x14x128xf32> to vector<14x128xf32>
    %690 = vector.shape_cast %687 : vector<14x128xf32> to vector<1x14x128xf32>
    tpu.vector_store %arg4[%c0_247, %c0_248, %c0_249], %690 {strides = array<i32>} : memref<3x14x128xf32, #tpu.memory_space<vmem>>, vector<1x14x128xf32>,
    %691 = vector.extract_strided_slice %673 {offsets = [0, 0], sizes = [14, 128], strides = [1, 1]} : vector<16x128xf32> to vector<14x128xf32>
    %c1_i32_250 = arith.constant 1 : i32
    %692 = arith.addi %0, %c1_i32_250 : i32
    %693 = arith.index_cast %692 : i32 to index
    %694 = memref.load %arg3[%693] : memref<6xf32, #tpu.memory_space<smem>>
    %695 = vector.broadcast %694 : f32 to vector<14x128xf32>
    %696 = arith.addf %691, %695 : vector<14x128xf32>
    %c1_251 = arith.constant 1 : index
    %c0_252 = arith.constant 0 : index
    %c0_253 = arith.constant 0 : index
    %697 = vector.load %arg4[%c1_251, %c0_252, %c0_253] : memref<3x14x128xf32, #tpu.memory_space<vmem>>, vector<1x14x128xf32>
    %698 = vector.shape_cast %697 : vector<1x14x128xf32> to vector<14x128xf32>
    %699 = vector.shape_cast %696 : vector<14x128xf32> to vector<1x14x128xf32>
    tpu.vector_store %arg4[%c1_251, %c0_252, %c0_253], %699 {strides = array<i32>} : memref<3x14x128xf32, #tpu.memory_space<vmem>>, vector<1x14x128xf32>,
    %700 = vector.extract_strided_slice %681 {offsets = [0, 0], sizes = [14, 128], strides = [1, 1]} : vector<16x128xf32> to vector<14x128xf32>
    %c2_i32_254 = arith.constant 2 : i32
    %701 = arith.addi %0, %c2_i32_254 : i32
    %702 = arith.index_cast %701 : i32 to index
    %703 = memref.load %arg3[%702] : memref<6xf32, #tpu.memory_space<smem>>
    %704 = vector.broadcast %703 : f32 to vector<14x128xf32>
    %705 = arith.addf %700, %704 : vector<14x128xf32>
    %c2_255 = arith.constant 2 : index
    %c0_256 = arith.constant 0 : index
    %c0_257 = arith.constant 0 : index
    %706 = vector.load %arg4[%c2_255, %c0_256, %c0_257] : memref<3x14x128xf32, #tpu.memory_space<vmem>>, vector<1x14x128xf32>
    %707 = vector.shape_cast %706 : vector<1x14x128xf32> to vector<14x128xf32>
    %708 = vector.shape_cast %705 : vector<14x128xf32> to vector<1x14x128xf32>
    tpu.vector_store %arg4[%c2_255, %c0_256, %c0_257], %708 {strides = array<i32>} : memref<3x14x128xf32, #tpu.memory_space<vmem>>, vector<1x14x128xf32>,
    return
  }
  func.func @transform_0(%arg0: i32) -> (i32, i32, i32) {
    %c0_i32 = arith.constant 0 : i32
    %c0_i32_0 = arith.constant 0 : i32
    %c0_i32_1 = arith.constant 0 : i32
    %c0_i32_2 = arith.constant 0 : i32
    return %c0_i32, %c0_i32_0, %c0_i32_1 : i32, i32, i32
  }
  func.func @transform_1(%arg0: i32) -> i32 {
    %c0_i32 = arith.constant 0 : i32
    %c0_i32_0 = arith.constant 0 : i32
    return %c0_i32 : i32
  }
  func.func @transform_2(%arg0: i32) -> i32 {
    %c0_i32 = arith.constant 0 : i32
    %c0_i32_0 = arith.constant 0 : i32
    return %c0_i32 : i32
  }
  func.func @transform_3(%arg0: i32) -> (i32, i32, i32) {
    %c0_i32 = arith.constant 0 : i32
    %c0_i32_0 = arith.constant 0 : i32
    %c0_i32_1 = arith.constant 0 : i32
    return %arg0, %c0_i32, %c0_i32_0 : i32, i32, i32
  }
}

</mosaic_0001>

<bundles_post_ra>
// kernel: tpu_custom_call.1
= control target key start
LH: loop header
LB: loop body
LE: loop exit
PB: predicated region body
PF: predicated region fallthrough
CT: control target
= control target key end

     0   :  { %s2338_s0 = inlined_call_operand.hbm [shape: f32[3,16,128], index: 0, kind: input, shape index: {}]   ;;  %s2339_s1 = inlined_call_operand.hbm [shape: f32[162], index: 1, kind: input, shape index: {}]   ;;  %s2340_s2 = inlined_call_operand.vmem [shape: f32[6], index: 2, kind: input, shape index: {}]   ;;  %s2341_s3 = inlined_call_operand.hbm [shape: f32[6,14,128], index: 3, kind: output, shape index: {}]  }
   0x1   :  { %2418 = sst [smem:[#allocation75_spill]] %s2338_s0 }
   0x2   :  { %2419 = sst [smem:[#allocation76_spill]] %s2339_s1 }
   0x3   :  { %2420 = sst [smem:[#allocation77_spill]] %s2340_s2 }
   0x4   :  { %2421 = sst [smem:[#allocation78_spill]] %s2341_s3 }
   0x5   :  { %8 = vsyncpa [#allocation3], 0 }
   0x6   :  { %9 = vsyncpa [#allocation5], 0 }
   0x7   :  { %10 = vsyncpa [#allocation6], 0 }
   0x8   :  { %11 = vsyncpa [#allocation4], 0 }
   0x9   :  { %13 = vsyncpa [#allocation4 + $0x1], 0  ;;  %s1242_s12 = smov 0   ;;  %s1244_s13 = smov 0  }
   0xa   :  { %s1246_s14 = smov 0   ;;  %s1248_s15 = smov 0  }
   0xb LB: > { %2422 = sst [smem:[#allocation14_spill]] %s1198_s12  ;;  %s1263_s16 = sadd.s32 4294967295, %s1210_s15   ;;  %s1210_s15 = sphi %s1248_s15, %s2682_s15   ;;  %s1206_s14 = sphi %s1246_s14, %s2685_s14   ;;  %s1202_s13 = sphi %s1244_s13, %s2684_s13   ;;  %s1198_s12 = sphi %s1242_s12, %s2683_s12  }
   0xc   : > { %2423 = sst [smem:[#allocation15_spill]] %s1202_s13  ;;  %s989_s17 = sadd.s32 4294967294, %s1210_s15  }
   0xd   : > { %2424 = sst [smem:[#allocation16_spill]] %s1206_s14  ;;  %s1267_s18 = sadd.s32 1, %s1210_s15  }
   0xe   : > { %2425 = sst [smem:[#allocation17_spill]] %s1210_s15  ;;  %s89_s19 = sadd.s32 1, %s1206_s14 }
   0xf   : > { %2426 = sst [smem:[#allocation18_spill]] %s1263_s16  ;;  %s86_s20 = ssub.s32 %s1210_s15, %s1267_s18 }
  0x10   : > { %2427 = sst [smem:[#allocation19_spill]] %s1267_s18  ;;  %p99_p0 = scmp.ne.s32.totalorder %s1206_s14, %s1202_s13 }
  0x11   : > { %p87_p1 = scmp.eq.s32.totalorder %s86_s20, 0  ;;  %p100_p2 = scmp.eq.s32.totalorder %s1263_s16, 1 }
  0x12   : > { %p105_p3 = scmp.ne.s32.totalorder %s1202_s13, %s1198_s12  ;;  %p106_p4 = scmp.eq.s32.totalorder %s989_s17, 1 }
  0x13   : > { %s1278_s21 = scalar_select %p87_p1, %s1206_s14, %s89_s19  }
  0x14   : > { %p1280_p5 = por %p100_p2, %p99_p0  ;;  %p1284_p6 = por %p106_p4, %p105_p3 }
  0x15   : > { %2428 = sst [smem:[#allocation20_spill]] %s1278_s21  ;;  %p990_p7 = scmp.ge.s32.totalorder %s1210_s15, 1 }
  0x16   : > { %s2429_s22 = scalar_select %p1280_p5, 1, 0 }
  0x17   : > { %s2431_s23 = scalar_select %p1284_p6, 1, 0 }
  0x18   : > { %2430 = sst [smem:[#allocation21_spill]] %s2429_s22  ;;  %p113_p8 = scmp.lt.s32.totalorder %s1210_s15, 3 }
  0x19   : > { %2432 = sst [smem:[#allocation22_spill]] %s2431_s23  ;;  %p1038_p9 = scmp.eq.s32.totalorder %s1263_s16, 0 }
  0x1a   : > { %p1291_p10 = pnand %p990_p7, %p113_p8  ;;  %s1212_s25 = smov [#allocation2]  }
  0x1b   : > { %s125_s26 = sshll.u32 %s1212_s25, 4  ;;  %s2435_s2 = sld [smem:[#allocation77_spill]]  ;;  %s126_s26 = int_to_ptr.vmem [resolvable:$true] %s125_s26 }
  0x1c   : > { %p1024_p11 = pneg %p1291_p10  ;;  %s1097_s4 = scalar_lea.vmem %s126_s26, 768 }
  0x1d   : > { %p1098_p0 = scmp.ne.s32.totalorder %s126_s26, %s1097_s4  ;;  %p1105_p3 = scmp.lt.s32.totalorder %s126_s26, %s126_s26 }
  0x1e   : > { %p1299_p12 = pnand %p1038_p9, %p1024_p11  ;;  %p1106_p4 = scmp.lt.s32.totalorder %s1097_s4, %s1097_s4 }
  0x20   : > { %p1088_p13 = pneg %p1299_p12  ;;  %p1107_p7 = por %p1106_p4, %p1105_p3 }
  0x21   : > { %s148_s30 = sshll.u32 %s2435_s2, 4  ;;  %s149_s30 = int_to_ptr.vmem [resolvable:$true] %s148_s30 }
  0x22   : > { %p1100_p1 = pnand %p1098_p0, %p1088_p13 }
  0x24   : > { %p1101_p2 = pneg %p1100_p1 }
  0x26   : > { %p1108_p8 = pnand %p1107_p7, %p1101_p2 }
  0x28   : > { %1111 = shalt.err (!%p1108_p8)
}
  0x29   : > { %s1213_s5 = smov 128   ;;  %s1214_s6 = smov 8  }
  0x2a   : > { %s2436_s0 = sld [smem:[#allocation75_spill]]  ;;  %s1215_s9 = smov [#allocation7]  }
  0x2b   : > { %s2437_s1 = sld [smem:[#allocation76_spill]]  ;;  %s1123_s17 = scalar_lea.vmem %s149_s30, 16 }
  0x2c   : > { %p1124_p11 = scmp.ne.s32.totalorder %s149_s30, %s1123_s17  ;;  %p1131_p2 = scmp.lt.s32.totalorder %s149_s30, %s149_s30 }
  0x2d   : > { %p1132_p3 = scmp.lt.s32.totalorder %s1123_s17, %s1123_s17 }
  0x2e   : > { %p1126_p0 = pnand %p1124_p11, %p1088_p13 }
  0x2f   : > { %p1133_p4 = por %p1132_p3, %p1131_p2 }
  0x30   : > { %1027 = dma.hbm_to_vmem [thread:$0]  (!%p1299_p12), %s2436_s0, 768, %s126_s26, [#allocation3], %s1213_s5, %s1213_s5, %s1214_s6  }
  0x31   : > { %1030 = dma.hbm_to_smem (!%p1299_p12), %s2437_s1, 32, %s1215_s9, [#allocation5]  }
  0x32   : > { %p1127_p1 = pneg %p1126_p0 }
  0x34   : > { %p1134_p7 = pnand %p1133_p4, %p1127_p1 }
  0x36   : > { %1137 = shalt.err (!%p1134_p7)
}
  0x37   : > { %s1216_s19 = smov [#allocation8]   ;;  %161 = sbr.rel (%p1291_p10) target bundleno = 338 (0x152), region = 32 }
  0x38   : > { %1033 = dma.vmem_to_smem (!%p1299_p12), %s149_s30, 16, %s1216_s19, [#allocation6]  }
  0x3c   : > { %1181 = dma.done.wait (%p1038_p9), [#allocation3], 768  }
  0x3d   : > { %1183 = vsyncadd (%p1038_p9), [#allocation3], 4294966528 }
  0x3e   : > { %1185 = dma.done.wait (%p1038_p9), [#allocation5], 32  }
  0x3f   : > { %1187 = vsyncadd (%p1038_p9), [#allocation5], 4294967264 }
  0x40   : > { %1189 = dma.done.wait (%p1038_p9), [#allocation6], 16  }
  0x41   : > { %1191 = vsyncadd (%p1038_p9), [#allocation6], 4294967280 }
  0x42   : > { %175 = sfence }
  0x43   : > { %v1340_v0 = vld [vmem:[#allocation2] sm:$0xff]  ;;  %v1342_v1 = vld [vmem:[#allocation2 + $0x8] sm:$0xff]  ;;  %v268_v2 = vlaneseq  ;;  %s2347_s20 = smov 126   ;;  %s2344_s24 = smov 127   ;;  %v1392_v12 = vld [vmem:[#allocation2 + $0x18] sm:$0xff] }
  0x44   : > { %241 = vrot.lane.b32.xlu1 %v1340_v0, %s2347_s20  ;;  %216 = vrot.lane.b32.xlu0 %v1340_v0, %s2344_s24  ;;  %v266_v3 = vrot.slane %v1340_v0, 1  ;;  %v267_v4 = vrot.slane %v1342_v1, 1  ;;  %v344_v8 = vrot.slane %v1340_v0, 2  ;;  %v345_v9 = vrot.slane %v1342_v1, 2  ;;  %v1394_v13 = vld [vmem:[#allocation2 + $0x10] sm:$0xff]  ;;  %s1403_s25 = smul.u32 3, %s1263_s16 }
  0x45   : > { %v1350_v5 = vshrl.u32 %v268_v2, 7  ;;  %v494_v14 = vrot.slane %v1394_v13, 1  ;;  %v495_v15 = vrot.slane %v1392_v12, 1  ;;  %s1419_s27 = smul.u32 81, %s1263_s16  ;;  %v569_v18 = vrot.slane %v1394_v13, 2  ;;  %v1483_v22 = vld [vmem:[#allocation2 + $0x28] sm:$0xff] }
  0x46   : > { %2438 = sst [smem:[#allocation23_spill]] %s1403_s25  ;;  %s2343_s26 = sadd.s32 1, %s1403_s25  ;;  %v570_v19 = vrot.slane %v1392_v12, 2  ;;  %v1485_v23 = vld [vmem:[#allocation2 + $0x20] sm:$0xff]  ;;  %v719_v25 = vrot.slane %v1483_v22, 1  ;;  %v794_v29 = vrot.slane %v1483_v22, 2 }
  0x47   : > { %vm270_vm0 = vcmp.lt.s32.totalorder %v1350_v5, 7  ;;  %vm346_vm1 = vcmp.lt.s32.totalorder %v1350_v5, 6  ;;  %s2342_s28 = sadd.s32 2, %s1403_s25  ;;  %s1430_s29 = smul.u32 27, %s2343_s26  ;;  %v718_v24 = vrot.slane %v1485_v23, 1  ;;  %v793_v28 = vrot.slane %v1485_v23, 2 }
  0x48   : > { %243 = vrot.lane.b32.xlu1 %v1342_v1, %s2347_s20  ;;  %218 = vrot.lane.b32.xlu0 %v1342_v1, %s2344_s24  ;;  %v1359_v6 = vsel %vm270_vm0, %v267_v4, %v266_v3  ;;  %v1363_v7 = vsel %vm270_vm0, %v266_v3, %v267_v4  ;;  %v1378_v10 = vsel %vm346_vm1, %v345_v9, %v344_v8  ;;  %s1434_s30 = smul.u32 27, %s2342_s28  ;;  %s245_s4 = sadd.s32 2, %s1419_s27 }
  0x49   : > { %v1382_v11 = vsel %vm346_vm1, %v344_v8, %v345_v9  ;;  %v1411_v16 = vsel %vm270_vm0, %v495_v15, %v494_v14  ;;  %v1415_v17 = vsel %vm270_vm0, %v494_v14, %v495_v15  ;;  %s220_s5 = sadd.s32 1, %s1419_s27  ;;  %v1444_v20 = vsel %vm346_vm1, %v570_v19, %v569_v18  ;;  %s252_s6 = sadd.s32 2, %s1430_s29 }
  0x4a   : > { %v1448_v21 = vsel %vm346_vm1, %v569_v18, %v570_v19  ;;  %s1452_s7 = sld [smem:[#allocation7 + %s1419_s27]]  ;;  %s259_s9 = sadd.s32 2, %s1434_s30  ;;  %v1523_v26 = vsel %vm270_vm0, %v719_v25, %v718_v24  ;;  %v1527_v27 = vsel %vm270_vm0, %v718_v24, %v719_v25  ;;  %v1565_v30 = vsel %vm346_vm1, %v794_v29, %v793_v28 }
  0x4b   : > { %s1454_s8 = sld [smem:[#allocation7 + %s245_s4]]  ;;  %s227_s19 = sadd.s32 1, %s1430_s29  ;;  %v1569_v31 = vsel %vm346_vm1, %v793_v28, %v794_v29 }
  0x4c   : > { %296 = vrot.lane.b32.xlu1 %v1359_v6, %s2344_s24  ;;  %294 = vrot.lane.b32.xlu0 %v1363_v7, %s2344_s24  ;;  %s1457_s10 = sld [smem:[#allocation7 + %s220_s5]]  ;;  %s234_s4 = sadd.s32 1, %s1434_s30 }
  0x4d   : > { %s1463_s11 = sld [smem:[#allocation7 + %s252_s6]]  ;;  %s273_s5 = sadd.s32 3, %s1419_s27 }
  0x4e   : > { %s1465_s17 = sld [smem:[#allocation7 + %s259_s9]]  ;;  %s280_s0 = sadd.s32 3, %s1430_s29 }
  0x4f   : > { %s1469_s28 = sld [smem:[#allocation7 + %s1430_s29]]  ;;  %s287_s2 = sadd.s32 3, %s1434_s30 }
  0x50   : > { %321 = vrot.lane.b32.xlu1 %v1359_v6, %s2347_s20  ;;  %319 = vrot.lane.b32.xlu0 %v1363_v7, %s2347_s20  ;;  %s1473_s26 = sld [smem:[#allocation7 + %s1434_s30]]  ;;  %s305_s14 = sadd.s32 4, %s1430_s29  ;;  %v195_v32 = vstv %s1452_s7 }
  0x51   : > { %2439 = sst [smem:[#allocation24_spill]] %s1454_s8  ;;  %s312_s18 = sadd.s32 4, %s1434_s30  ;;  %v1663_v37 = vmul.f32 %v195_v32, %v1340_v0  ;;  %v1666_v38 = vmul.f32 %v195_v32, %v1342_v1 }
  0x52   : > { %2440 = sst [smem:[#allocation25_spill]] %s1457_s10  ;;  %s330_s23 = sadd.s32 5, %s1430_s29  ;;  %v2415_v36 = vstv %s1457_s10 }
  0x53   : > { %2441 = sst [smem:[#allocation26_spill]] %s1463_s11  ;;  %s337_s15 = sadd.s32 5, %s1434_s30 }
  0x54   : > { %372 = vrot.lane.b32.xlu1 %v1378_v10, %s2344_s24  ;;  %370 = vrot.lane.b32.xlu0 %v1382_v11, %s2344_s24  ;;  %2442 = sst [smem:[#allocation27_spill]] %s1465_s17  ;;  %s2449_s3 = smov 126  }
  0x55   : > { %s1480_s6 = sld [smem:[#allocation7 + %s227_s19]]  ;;  %s349_s22 = sadd.s32 6, %s1419_s27  ;;  %v203_v33 = vstv %s1469_s28 }
  0x56   : > { %s1487_s9 = sld [smem:[#allocation7 + %s234_s4]]  ;;  %s356_s16 = sadd.s32 6, %s1430_s29  ;;  %v211_v34 = vstv %s1473_s26  ;;  %v1674_v41 = vmul.f32 %v203_v33, %v1340_v0  ;;  %v1685_v45 = vmul.f32 %v203_v33, %v1342_v1 }
  0x57   : > { %s1490_s1 = sld [smem:[#allocation7 + %s273_s5]]  ;;  %s363_s13 = sadd.s32 6, %s1434_s30  ;;  %v1681_v43 = vmul.f32 %v211_v34, %v1340_v0  ;;  %v1693_v48 = vmul.f32 %v211_v34, %v1342_v1 }
  0x58   : > { %397 = vrot.lane.b32.xlu1 %v1378_v10, %s2347_s20  ;;  %395 = vrot.lane.b32.xlu0 %v1382_v11, %s2347_s20  ;;  %s1500_s19 = sld [smem:[#allocation7 + %s280_s0]]  ;;  %s637_s7 = sadd.s32 17, %s1434_s30 }
  0x59   : > { %s1505_s4 = sld [smem:[#allocation7 + %s287_s2]]  ;;  %s654_s11 = sadd.s32 18, %s1430_s29 }
  0x5a   : > { %s1508_s5 = sld [smem:[#allocation7 + %s305_s14]]  ;;  %s374_s14 = sadd.s32 7, %s1419_s27 }
  0x5b   : > { %2443 = sst [smem:[#allocation28_spill]] %s1480_s6  ;;  %v2416_v44 = vstv %s1480_s6  ;;  %s679_s6 = sadd.s32 19, %s1430_s29 }
  0x5c   : > { %446 = vrot.lane.b32.xlu1 %v1392_v12, %s2344_s24  ;;  %444 = vrot.lane.b32.xlu0 %v1394_v13, %s2344_s24  ;;  %2444 = sst [smem:[#allocation29_spill]] %s1487_s9  ;;  %v2417_v47 = vstv %s1487_s9  ;;  %s711_s17 = sadd.s32 20, %s1434_s30 }
  0x5d   : > { %s1511_s12 = sld [smem:[#allocation7 + %s312_s18]]  ;;  %v275_v42 = vstv %s1490_s1 }
  0x5e   : > { %s1529_s2 = sld [smem:[#allocation7 + %s330_s23]]  ;;  %v282_v46 = vstv %s1500_s19  ;;  %v1701_v51 = vmul.f32 %v275_v42, %v1359_v6  ;;  %v1707_v53 = vmul.f32 %v275_v42, %v1363_v7 }
  0x5f   : > { %s1532_s18 = sld [smem:[#allocation7 + %s337_s15]]  ;;  %v289_v50 = vstv %s1505_s4  ;;  %v1704_v52 = vmul.f32 %v282_v46, %v1359_v6  ;;  %s661_s4 = sadd.s32 18, %s1434_s30  ;;  %v1718_v57 = vmul.f32 %v282_v46, %v1363_v7 }
  0x60   : > { %471 = vrot.lane.b32.xlu1 %v1392_v12, %s2347_s20  ;;  %469 = vrot.lane.b32.xlu0 %v1394_v13, %s2347_s20  ;;  %2447 = sst [smem:[#allocation31_spill]] %s1508_s5  ;;  %v1714_v55 = vmul.f32 %v289_v50, %v1359_v6  ;;  %v1726_v60 = vmul.f32 %v289_v50, %v1363_v7 }
  0x61   : > { %s1542_s25 = sld [smem:[#allocation7 + %s374_s14]] }
  0x62   : > { %s1547_s15 = sld [smem:[#allocation7 + %s356_s16]]  ;;  %s413_s16 = sadd.s32 8, %s1434_s30 }
  0x63   : > { %2448 = sst [smem:[#allocation32_spill]] %s1511_s12  ;;  %s406_s12 = sadd.s32 8, %s1430_s29 }
  0x64   : > { %521 = vrot.lane.b32.xlu1 %v1411_v16, %s2344_s24  ;;  %519 = vrot.lane.b32.xlu0 %v1415_v17, %s2344_s24  ;;  %2451 = sst [smem:[#allocation34_spill]] %s1529_s2 }
  0x65   : > { %2452 = sst [smem:[#allocation35_spill]] %s1532_s18  ;;  %s399_s18 = sadd.s32 8, %s1419_s27 }
  0x66   : > { %s1550_s23 = sld [smem:[#allocation7 + %s363_s13]] }
  0x67   : > { %2453 = sst [smem:[#allocation36_spill]] %s1542_s25  ;;  %s448_s25 = sadd.s32 10, %s1419_s27 }
  0x68   : > { %546 = vrot.lane.b32.xlu1 %v1411_v16, %s2347_s20  ;;  %544 = vrot.lane.b32.xlu0 %v1415_v17, %s2347_s20  ;;  %2454 = sst [smem:[#allocation37_spill]] %s1547_s15  ;;  %s473_s15 = sadd.s32 11, %s1419_s27 }
  0x69   : > { %s1571_s13 = sld [smem:[#allocation7 + %s399_s18]]  ;;  %s437_s18 = sadd.s32 9, %s1434_s30 }
  0x6c   : > { %596 = vrot.lane.b32.xlu1 %v1444_v20, %s2344_s24  ;;  %594 = vrot.lane.b32.xlu0 %v1448_v21, %s2344_s24  ;;  %s298_s24 = sadd.s32 4, %s1419_s27  ;;  %2455 = sst [smem:[#allocation38_spill]] %s1550_s23 }
  0x6d   : > { %s1493_s21 = sld [smem:[#allocation7 + %s298_s24]]  ;;  %s323_s24 = sadd.s32 5, %s1419_s27 }
  0x6e   : > { %s1518_s0 = sld [smem:[#allocation7 + %s323_s24]] }
  0x6f   : > { %s1535_s24 = sld [smem:[#allocation7 + %s349_s22]]  ;;  %s388_s22 = sadd.s32 7, %s1434_s30 }
  0x70   : > { %621 = vrot.lane.b32.xlu1 %v1444_v20, %s2347_s20  ;;  %619 = vrot.lane.b32.xlu0 %v1448_v21, %s2347_s20  ;;  %s2446_s20 = smov 127   ;;  %s1560_s14 = sld [smem:[#allocation7 + %s388_s22]] }
  0x71   : > { %2458 = sst [smem:[#allocation41_spill]] %s1571_s13 }
  0x72   : > { %s1577_s22 = sld [smem:[#allocation7 + %s413_s16]]  ;;  %s462_s16 = sadd.s32 10, %s1434_s30 }
  0x73   : > { %2445 = sst [smem:[#allocation30_spill]] %s1493_s21 }
  0x74   : > { %670 = vrot.lane.b32.xlu1 %v1483_v22, %s2446_s20  ;;  %668 = vrot.lane.b32.xlu0 %v1485_v23, %s2446_s20  ;;  %2450 = sst [smem:[#allocation33_spill]] %s1518_s0  ;;  %s381_s0 = sadd.s32 7, %s1430_s29 }
  0x75   : > { %s1553_s2 = sld [smem:[#allocation7 + %s381_s0]]  ;;  %s423_s0 = sadd.s32 9, %s1419_s27  ;;  %v351_v54 = vstv %s1535_s24 }
  0x76   : > { %2457 = sst [smem:[#allocation40_spill]] %s1560_s14  ;;  %s430_s14 = sadd.s32 9, %s1430_s29  ;;  %v1736_v1 = vmul.f32 %v351_v54, %v1378_v10  ;;  %v1746_v4 = vmul.f32 %v351_v54, %v1382_v11 }
  0x77   : > { %s1584_s23 = sld [smem:[#allocation7 + %s423_s0]] }
  0x78   : > { %695 = vrot.lane.b32.xlu1 %v1483_v22, %s2449_s3  ;;  %693 = vrot.lane.b32.xlu0 %v1485_v23, %s2449_s3  ;;  %2460 = sst [smem:[#allocation43_spill]] %s1577_s22 }
  0x79   : > { %s1587_s13 = sld [smem:[#allocation7 + %s448_s25]]  ;;  %s480_s25 = sadd.s32 11, %s1430_s29 }
  0x7a   : > { %s1593_s22 = sld [smem:[#allocation7 + %s437_s18]]  ;;  %s498_s18 = sadd.s32 12, %s1419_s27 }
  0x7b   : > { %2456 = sst [smem:[#allocation39_spill]] %s1553_s2 }
  0x7c   : > { %745 = vrot.lane.b32.xlu1 %v1523_v26, %s2446_s20  ;;  %743 = vrot.lane.b32.xlu0 %v1527_v27, %s2446_s20  ;;  %s1574_s2 = sld [smem:[#allocation7 + %s406_s12]]  ;;  %s455_s12 = sadd.s32 10, %s1430_s29 }
  0x7d   : > { %2461 = sst [smem:[#allocation44_spill]] %s1584_s23 }
  0x7e   : > { %s1603_s0 = sld [smem:[#allocation7 + %s462_s16]] }
  0x7f   : > { %2462 = sst [smem:[#allocation45_spill]] %s1587_s13 }
  0x80   : > { %770 = vrot.lane.b32.xlu1 %v1523_v26, %s2449_s3  ;;  %768 = vrot.lane.b32.xlu0 %v1527_v27, %s2449_s3  ;;  %2464 = sst [smem:[#allocation47_spill]] %s1593_s22 }
  0x81   : > { %s1606_s13 = sld [smem:[#allocation7 + %s473_s15]] }
  0x82   : > { %2459 = sst [smem:[#allocation42_spill]] %s1574_s2 }
  0x83   : > { %s1590_s2 = sld [smem:[#allocation7 + %s430_s14]]  ;;  %s487_s14 = sadd.s32 11, %s1434_s30 }
  0x84   : > { %820 = vrot.lane.b32.xlu1 %v1565_v30, %s2446_s20  ;;  %818 = vrot.lane.b32.xlu0 %v1569_v31, %s2446_s20  ;;  %s1600_s20 = sld [smem:[#allocation7 + %s455_s12]] }
  0x85   : > { %2466 = sst [smem:[#allocation49_spill]] %s1603_s0  ;;  %s530_s0 = sadd.s32 13, %s1430_s29 }
  0x86   : > { %s1609_s22 = sld [smem:[#allocation7 + %s480_s25]] }
  0x87   : > { %2467 = sst [smem:[#allocation50_spill]] %s1606_s13  ;;  %s537_s13 = sadd.s32 13, %s1434_s30 }
  0x88   : > { %845 = vrot.lane.b32.xlu1 %v1565_v30, %s2449_s3  ;;  %843 = vrot.lane.b32.xlu0 %v1569_v31, %s2449_s3  ;;  %s1612_s23 = sld [smem:[#allocation7 + %s487_s14]]  ;;  %s505_s3 = sadd.s32 12, %s1430_s29 }
  0x89   : > { %2463 = sst [smem:[#allocation46_spill]] %s1590_s2  ;;  %s523_s2 = sadd.s32 13, %s1419_s27 }
  0x8a   : > { %2465 = sst [smem:[#allocation48_spill]] %s1600_s20  ;;  %s512_s20 = sadd.s32 12, %s1434_s30 }
  0x8b   : > { %s1615_s12 = sld [smem:[#allocation7 + %s498_s18]] }
  0x8c   : > { %2468 = sst [smem:[#allocation51_spill]] %s1609_s22  ;;  %s548_s22 = sadd.s32 14, %s1419_s27 }
  0x8d   : > { %s1618_s16 = sld [smem:[#allocation7 + %s523_s2]] }
  0x8e   : > { %2469 = sst [smem:[#allocation52_spill]] %s1612_s23  ;;  %s555_s23 = sadd.s32 14, %s1430_s29 }
  0x8f   : > { %s1621_s15 = sld [smem:[#allocation7 + %s505_s3]]  ;;  %s573_s3 = sadd.s32 15, %s1419_s27 }
  0x90   : > { %s1624_s25 = sld [smem:[#allocation7 + %s512_s20]]  ;;  %s598_s20 = sadd.s32 16, %s1419_s27 }
  0x91   : > { %2470 = sst [smem:[#allocation53_spill]] %s1615_s12  ;;  %s562_s12 = sadd.s32 14, %s1434_s30 }
  0x92   : > { %s1627_s14 = sld [smem:[#allocation7 + %s530_s0]]  ;;  %s580_s0 = sadd.s32 15, %s1430_s29 }
  0x93   : > { %2471 = sst [smem:[#allocation54_spill]] %s1618_s16 }
  0x94   : > { %s1630_s18 = sld [smem:[#allocation7 + %s537_s13]] }
  0x95   : > { %2472 = sst [smem:[#allocation55_spill]] %s1621_s15  ;;  %s587_s15 = sadd.s32 15, %s1434_s30 }
  0x96   : > { %2473 = sst [smem:[#allocation56_spill]] %s1624_s25 }
  0x97   : > { %s1633_s2 = sld [smem:[#allocation7 + %s548_s22]] }
  0x98   : > { %2474 = sst [smem:[#allocation57_spill]] %s1627_s14 }
  0x99   : > { %s1636_s16 = sld [smem:[#allocation7 + %s555_s23]]  ;;  %s612_s23 = sadd.s32 16, %s1434_s30 }
  0x9a   : > { %2475 = sst [smem:[#allocation58_spill]] %s1630_s18  ;;  %s605_s18 = sadd.s32 16, %s1430_s29 }
  0x9b   : > { %s1639_s25 = sld [smem:[#allocation7 + %s562_s12]]  ;;  %s623_s12 = sadd.s32 17, %s1419_s27 }
  0x9c   : > { %s1642_s14 = sld [smem:[#allocation7 + %s573_s3]] }
  0x9d   : > { %2476 = sst [smem:[#allocation59_spill]] %s1633_s2  ;;  %s822_s2 = sadd.s32 25, %s1419_s27 }
  0x9e   : > { %s1645_s13 = sld [smem:[#allocation7 + %s598_s20]]  ;;  %s630_s20 = sadd.s32 17, %s1430_s29 }
  0x9f   : > { %2477 = sst [smem:[#allocation60_spill]] %s1636_s16 }
  0xa0   : > { %s1649_s22 = sld [smem:[#allocation7 + %s580_s0]]  ;;  %s672_s0 = sadd.s32 19, %s1419_s27 }
  0xa1   : > { %2478 = sst [smem:[#allocation61_spill]] %s1639_s25  ;;  %s786_s25 = sadd.s32 23, %s1434_s30 }
  0xa2   : > { %s1653_s16 = sld [smem:[#allocation7 + %s587_s15]]  ;;  %s647_s15 = sadd.s32 18, %s1419_s27 }
  0xa3   : > { %s1657_s3 = sld [smem:[#allocation7 + %s605_s18]] }
  0xa4   : > { %2479 = sst [smem:[#allocation62_spill]] %s1645_s13 }
  0xa5   : > { %s1668_s28 = sld [smem:[#allocation7 + %s612_s23]] }
  0xa6   : > { %s1677_s26 = sld [smem:[#allocation7 + %s623_s12]] }
  0xa7   : > { %s1688_s18 = sld [smem:[#allocation7 + %s630_s20]] }
  0xa8   : > { %s2483_s23 = sld [smem:[#allocation37_spill]] }
  0xa9   : > { %2480 = sst [smem:[#allocation63_spill]] %s1657_s3  ;;  %s804_s3 = sadd.s32 24, %s1430_s29 }
  0xaa   : > { %s1697_s12 = sld [smem:[#allocation7 + %s637_s7]]  ;;  %s772_s7 = sadd.s32 23, %s1419_s27 }
  0xab   : > { %s2487_s8 = sld [smem:[#allocation38_spill]] }
  0xac   : > { %2481 = sst [smem:[#allocation64_spill]] %s1677_s26  ;;  %s722_s26 = sadd.s32 21, %s1419_s27 }
  0xad   : > { %2482 = sst [smem:[#allocation65_spill]] %s1688_s18 }
  0xae   : > { %s1710_s21 = sld [smem:[#allocation7 + %s647_s15]]  ;;  %v358_v58 = vstv %s2483_s23 }
  0xaf   : > { %s1721_s9 = sld [smem:[#allocation7 + %s672_s0]]  ;;  %v1743_v3 = vmul.f32 %v358_v58, %v1378_v10  ;;  %v1749_v5 = vmul.f32 %v358_v58, %v1382_v11  ;;  %s729_s0 = sadd.s32 21, %s1430_s29 }
  0xb0   : > { %2485 = sst [smem:[#allocation37_spill]] %s1697_s12  ;;  %s686_s12 = sadd.s32 19, %s1434_s30 }
  0xb1   : > { %s2492_s10 = sld [smem:[#allocation44_spill]]  ;;  %v365_v62 = vstv %s2487_s8  ;;  %s747_s8 = sadd.s32 22, %s1419_s27 }
  0xb2   : > { %s1730_s15 = sld [smem:[#allocation7 + %s654_s11]]  ;;  %v1756_v7 = vmul.f32 %v365_v62, %v1378_v10  ;;  %v1766_v18 = vmul.f32 %v365_v62, %v1382_v11  ;;  %v589_v10 = vstv %s1653_s16 }
  0xb3   : > { %s2494_s5 = sld [smem:[#allocation46_spill]]  ;;  %v1867_v24 = vmul.f32 %v589_v10, %v1444_v20  ;;  %v1879_v15 = vmul.f32 %v589_v10, %v1448_v21 }
  0xb4   : > { %s2495_s18 = sld [smem:[#allocation47_spill]] }
  0xb5   : > { %2491 = sst [smem:[#allocation38_spill]] %s1721_s9  ;;  %s697_s9 = sadd.s32 20, %s1419_s27 }
  0xb6   : > { %s1739_s23 = sld [smem:[#allocation7 + %s661_s4]]  ;;  %s704_s4 = sadd.s32 20, %s1430_s29  ;;  %v242_v61 = vpop.permute.xlu1 %241 }
  0xb7   : > { %v425_v6 = vstv %s2492_s10  ;;  %s1752_s20 = sld [smem:[#allocation7 + %s679_s6]]  ;;  %s754_s10 = sadd.s32 22, %s1430_s29 }
  0xb8   : > { %s1761_s19 = sld [smem:[#allocation7 + %s686_s12]]  ;;  %v1775_v25 = vmul.f32 %v425_v6, %v1392_v12  ;;  %v1779_v29 = vmul.f32 %v425_v6, %v1394_v13  ;;  %v656_v58 = vstv %s1730_s15 }
  0xb9   : > { %v432_v9 = vstv %s2494_s5  ;;  %s1770_s6 = sld [smem:[#allocation7 + %s697_s9]] }
  0xba   : > { %v439_v14 = vstv %s2495_s18  ;;  %s2506_s24 = sld [smem:[#allocation56_spill]]  ;;  %v1785_v11 = vmul.f32 %v432_v9, %v1392_v12  ;;  %v1791_v33 = vmul.f32 %v432_v9, %v1394_v13 }
  0xbb   : > { %s2507_s5 = sld [smem:[#allocation49_spill]]  ;;  %v1788_v32 = vmul.f32 %v439_v14, %v1392_v12  ;;  %v1799_v46 = vmul.f32 %v439_v14, %v1394_v13  ;;  %v575_v12 = vstv %s1642_s14  ;;  %s797_s14 = sadd.s32 24, %s1419_s27 }
  0xbc   : > { %2497 = sst [smem:[#allocation44_spill]] %s1739_s23  ;;  %v1850_v19 = vmul.f32 %v575_v12, %v1444_v20  ;;  %v1860_v42 = vmul.f32 %v575_v12, %v1448_v21 }
  0xbd   : > { %2501 = sst [smem:[#allocation46_spill]] %s1752_s20 }
  0xbe   : > { %s2503_s23 = sld [smem:[#allocation53_spill]] }
  0xbf   : > { %s2505_s20 = sld [smem:[#allocation55_spill]] }
  0xc0   : > { %s2508_s18 = sld [smem:[#allocation50_spill]]  ;;  %v514_v54 = vstv %s2506_s24  ;;  %s761_s24 = sadd.s32 22, %s1434_s30 }
  0xc1   : > { %s1781_s12 = sld [smem:[#allocation7 + %s704_s4]]  ;;  %v1828_v62 = vmul.f32 %v514_v54, %v1411_v16  ;;  %v1840_v28 = vmul.f32 %v514_v54, %v1415_v17 }
  0xc2   : > { %s2510_s1 = sld [smem:[#allocation51_spill]] }
  0xc3   : > { %s2511_s9 = sld [smem:[#allocation52_spill]] }
  0xc4   : > { %v500_v34 = vstv %s2503_s23  ;;  %s1794_s11 = sld [smem:[#allocation7 + %s711_s17]]  ;;  %s779_s17 = sadd.s32 23, %s1430_s29 }
  0xc5   : > { %v507_v50 = vstv %s2505_s20  ;;  %s1803_s4 = sld [smem:[#allocation7 + %s722_s26]]  ;;  %v1814_v13 = vmul.f32 %v500_v34, %v1411_v16  ;;  %v1818_v14 = vmul.f32 %v500_v34, %v1415_v17  ;;  %v582_v34 = vstv %s1649_s22 }
  0xc6   : > { %s1821_s20 = sld [smem:[#allocation7 + %s729_s0]]  ;;  %v1825_v6 = vmul.f32 %v507_v50, %v1411_v16  ;;  %v1831_v9 = vmul.f32 %v507_v50, %v1415_v17  ;;  %v1857_v54 = vmul.f32 %v582_v34, %v1444_v20  ;;  %v649_v50 = vstv %s1710_s21 }
  0xc7   : > { %2509 = sst [smem:[#allocation47_spill]] %s1781_s12  ;;  %s736_s12 = sadd.s32 21, %s1434_s30  ;;  %v1871_v17 = vmul.f32 %v582_v34, %v1448_v21  ;;  %v1889_v16 = vmul.f32 %v649_v50, %v1483_v22  ;;  %v1895_v21 = vmul.f32 %v656_v58, %v1483_v22  ;;  %v1898_v10 = vmul.f32 %v649_v50, %v1485_v23 }
  0xc8   : > { %s1843_s0 = sld [smem:[#allocation7 + %s754_s10]]  ;;  %v1901_v20 = vmul.f32 %v656_v58, %v1485_v23 }
  0xc9   : > { %s1852_s22 = sld [smem:[#allocation7 + %s761_s24]] }
  0xca   : > { %2513 = sst [smem:[#allocation53_spill]] %s1794_s11 }
  0xcb   : > { %s1810_s11 = sld [smem:[#allocation7 + %s747_s8]]  ;;  %v724_v34 = vstv %s1803_s4 }
  0xcc   : > { %s1834_s8 = sld [smem:[#allocation7 + %s736_s12]]  ;;  %v731_v0 = vstv %s1821_s20  ;;  %v1927_v49 = vmul.f32 %v724_v34, %v1527_v27 }
  0xcd   : > { %s2519_s23 = sld [smem:[#allocation44_spill]]  ;;  %v1936_v56 = vmul.f32 %v731_v0, %v1527_v27 }
  0xce   : > { %s2520_s16 = sld [smem:[#allocation65_spill]]  ;;  %2531 = vst [vmem:[#allocation68_spill] sm:$0xff] %v1927_v49 }
  0xcf   : > { %s2521_s10 = sld [smem:[#allocation37_spill]]  ;;  %2536 = vst [vmem:[#allocation71_spill] sm:$0xff] %v1936_v56 }
  0xd0   : > { %s1864_s26 = sld [smem:[#allocation7 + %s797_s14]] }
  0xd1   : > { %2516 = sst [smem:[#allocation55_spill]] %s1810_s11 }
  0xd2   : > { %s1874_s13 = sld [smem:[#allocation7 + %s772_s7]]  ;;  %v738_v63 = vstv %s1834_s8 }
  0xd3   : > { %s2523_s21 = sld [smem:[#allocation46_spill]]  ;;  %v663_v2 = vstv %s2519_s23  ;;  %v1933_v59 = vmul.f32 %v738_v63, %v1523_v26  ;;  %v1944_v39 = vmul.f32 %v738_v63, %v1527_v27 }
  0xd4   : > { %s1883_s14 = sld [smem:[#allocation7 + %s779_s17]]  ;;  %v1907_v8 = vmul.f32 %v663_v2, %v1483_v22  ;;  %v1916_v50 = vmul.f32 %v663_v2, %v1485_v23  ;;  %v1923_v22 = vmul.f32 %v724_v34, %v1523_v26  ;;  %v217_v23 = vpop.permute.xlu0 %216  ;;  %v1930_v2 = vmul.f32 %v731_v0, %v1523_v26 }
  0xd5   : > { %s2524_s7 = sld [smem:[#allocation47_spill]]  ;;  %2534 = vst [vmem:[#allocation70_spill] sm:$0xff] %v1933_v59  ;;  %v223_v58 = vmul.f32 %v2415_v36, %v217_v23  ;;  %2538 = vst [vmem:[#allocation72_spill] sm:$0xff] %v1944_v39  ;;  %v230_v35 = vmul.f32 %v2416_v44, %v217_v23  ;;  %v237_v26 = vmul.f32 %v2417_v47, %v217_v23 }
  0xd6   : > { %s1892_s15 = sld [smem:[#allocation7 + %s786_s25]]  ;;  %2527 = vst [vmem:[#allocation66_spill] sm:$0xff] %v1916_v50  ;;  %2530 = vst [vmem:[#allocation67_spill] sm:$0xff] %v1923_v22  ;;  %v799_v12 = vstv %s1864_s26 }
  0xd7   : > { %s2525_s12 = sld [smem:[#allocation53_spill]]  ;;  %2533 = vst [vmem:[#allocation69_spill] sm:$0xff] %v1930_v2  ;;  %v225_v36 = vadd.f32 %v223_v58, %v1663_v37  ;;  %v1959_v27 = vmul.f32 %v799_v12, %v1565_v30  ;;  %v232_v23 = vadd.f32 %v230_v35, %v1674_v41  ;;  %v239_v0 = vadd.f32 %v237_v26, %v1681_v43 }
  0xd8   : > { %s1904_s23 = sld [smem:[#allocation7 + %s822_s2]]  ;;  %s811_s2 = sadd.s32 24, %s1434_s30  ;;  %v219_v49 = vpop.permute.xlu0 %218  ;;  %v1970_v40 = vmul.f32 %v799_v12, %v1569_v31 }
  0xd9   : > { %s1912_s25 = sld [smem:[#allocation7 + %s804_s3]]  ;;  %2540 = vst [vmem:[#allocation73_spill] sm:$0xff] %v1959_v27 }
  0xda   : > { %s2526_s17 = sld [smem:[#allocation25_spill]]  ;;  %2543 = vst [vmem:[#allocation74_spill] sm:$0xff] %v1970_v40 }
  0xdb   : > { %s2528_s4 = sld [smem:[#allocation28_spill]] }
  0xdc   : > { %s2529_s24 = sld [smem:[#allocation29_spill]] }
  0xdd   : > { %s2532_s3 = sld [smem:[#allocation24_spill]] }
  0xde   : > { %s2535_s20 = sld [smem:[#allocation26_spill]] }
  0xdf   : > { %s2537_s8 = sld [smem:[#allocation27_spill]]  ;;  %v806_v58 = vstv %s1912_s25 }
  0xe0   : > { %s1946_s11 = sld [smem:[#allocation7 + %s811_s2]]  ;;  %v2544_v22 = vstv %s2526_s17 }
  0xe1   : > { %v2545_v50 = vstv %s2528_s4  ;;  %s2548_s26 = sld [smem:[#allocation30_spill]] }
  0xe2   : > { %v2549_v26 = vstv %s2529_s24  ;;  %s2550_s2 = sld [smem:[#allocation31_spill]] }
  0xe3   : > { %v2539_v56 = vstv %s2532_s3  ;;  %s2551_s25 = sld [smem:[#allocation32_spill]] }
  0xe4   : > { %v248_v59 = vmul.f32 %v2539_v56, %v242_v61  ;;  %v2541_v63 = vstv %s2535_s20  ;;  %v244_v56 = vpop.permute.xlu1 %243  ;;  %v2547_v41 = vstv %s2535_s20  ;;  %s2553_s24 = sld [smem:[#allocation33_spill]] }
  0xe5   : > { %v255_v34 = vmul.f32 %v2541_v63, %v242_v61  ;;  %v2542_v44 = vstv %s2537_s8  ;;  %v224_v63 = vmul.f32 %v2544_v22, %v219_v49  ;;  %v256_v43 = vmul.f32 %v2547_v41, %v244_v56  ;;  %s2555_s17 = sld [smem:[#allocation34_spill]] }
  0xe6   : > { %v262_v39 = vmul.f32 %v2542_v44, %v242_v61  ;;  %v250_v47 = vadd.f32 %v248_v59, %v225_v36  ;;  %v231_v44 = vmul.f32 %v2545_v50, %v219_v49  ;;  %v2546_v61 = vstv %s2532_s3  ;;  %s2558_s4 = sld [smem:[#allocation35_spill]] }
  0xe7   : > { %v257_v27 = vadd.f32 %v255_v34, %v232_v23  ;;  %v249_v35 = vmul.f32 %v2546_v61, %v244_v56  ;;  %v238_v36 = vmul.f32 %v2549_v26, %v219_v49  ;;  %v226_v12 = vadd.f32 %v224_v63, %v1666_v38  ;;  %v295_v34 = vpop.permute.xlu0 %294  ;;  %s2565_s3 = sld [smem:[#allocation36_spill]] }
  0xe8   : > { %v264_v2 = vadd.f32 %v262_v39, %v239_v0  ;;  %v278_v59 = vadd.f32 %v1707_v53, %v250_v47  ;;  %v233_v39 = vadd.f32 %v231_v44, %v1685_v45  ;;  %v297_v22 = vpop.permute.xlu1 %296  ;;  %v2552_v23 = vstv %s2537_s8  ;;  %s2567_s20 = sld [smem:[#allocation39_spill]] }
  0xe9   : > { %v285_v50 = vadd.f32 %v1718_v57, %v257_v27  ;;  %v263_v61 = vmul.f32 %v2552_v23, %v244_v56  ;;  %v240_v49 = vadd.f32 %v238_v36, %v1693_v48  ;;  %v1991_v47 = vmul.f32 %v806_v58, %v1565_v30  ;;  %s2569_s8 = sld [smem:[#allocation40_spill]] }
  0xea   : > { %v292_v0 = vadd.f32 %v1726_v60, %v264_v2  ;;  %v251_v38 = vadd.f32 %v249_v35, %v226_v12  ;;  %v258_v63 = vadd.f32 %v256_v43, %v233_v39  ;;  %v2554_v45 = vstv %s2548_s26  ;;  %s2572_s26 = sld [smem:[#allocation41_spill]] }
  0xeb   : > { %v301_v44 = vmul.f32 %v2554_v45, %v295_v34  ;;  %v2556_v41 = vstv %s2550_s2  ;;  %v265_v57 = vadd.f32 %v263_v61, %v240_v49  ;;  %v2557_v27 = vmov %v2554_v45  ;;  %s2574_s2 = sld [smem:[#allocation42_spill]] }
  0xec   : > { %v308_v26 = vmul.f32 %v2556_v41, %v295_v34  ;;  %v302_v60 = vmul.f32 %v2557_v27, %v297_v22  ;;  %v2559_v2 = vmov %v2556_v41  ;;  %v2560_v48 = vstv %s2551_s25  ;;  %v322_v45 = vpop.permute.xlu1 %321  ;;  %v320_v41 = vpop.permute.xlu0 %319  ;;  %s2576_s25 = sld [smem:[#allocation43_spill]] }
  0xed   : > { %v309_v56 = vmul.f32 %v2559_v2, %v297_v22  ;;  %v315_v36 = vmul.f32 %v2560_v48, %v295_v34  ;;  %v279_v23 = vadd.f32 %v1701_v51, %v251_v38  ;;  %v286_v35 = vadd.f32 %v1704_v52, %v258_v63 }
  0xee   : > { %v2561_v43 = vmov %v2560_v48  ;;  %v303_v39 = vadd.f32 %v301_v44, %v278_v59  ;;  %v293_v61 = vadd.f32 %v1714_v55, %v265_v57  ;;  %v310_v49 = vadd.f32 %v308_v26, %v285_v50 }
  0xef   : > { %v316_v12 = vmul.f32 %v2561_v43, %v297_v22  ;;  %v2562_v27 = vstv %s2553_s24  ;;  %v2563_v53 = vstv %s2555_s17  ;;  %v304_v40 = vadd.f32 %v302_v60, %v279_v23  ;;  %s829_s24 = sadd.s32 25, %s1430_s29  ;;  %s2585_s17 = sld [smem:[#allocation45_spill]] }
  0xf0   : > { %v327_v37 = vmul.f32 %v2562_v27, %v322_v45  ;;  %v334_v2 = vmul.f32 %v2563_v53, %v322_v45  ;;  %v311_v34 = vadd.f32 %v309_v56, %v286_v35  ;;  %v2564_v48 = vstv %s2558_s4  ;;  %s2586_s4 = sld [smem:[#allocation48_spill]] }
  0xf1   : > { %v341_v51 = vmul.f32 %v2564_v48, %v322_v45  ;;  %v2566_v38 = vmov %v2562_v27  ;;  %v318_v63 = vadd.f32 %v316_v12, %v293_v61  ;;  %v317_v22 = vadd.f32 %v315_v36, %v292_v0  ;;  %v373_v27 = vpop.permute.xlu1 %372 }
  0xf2   : > { %v326_v52 = vmul.f32 %v2566_v38, %v320_v41  ;;  %v2568_v59 = vmov %v2563_v53  ;;  %v2570_v43 = vmov %v2564_v48  ;;  %v329_v50 = vadd.f32 %v327_v37, %v304_v40  ;;  %v371_v53 = vpop.permute.xlu0 %370 }
  0xf3   : > { %v333_v44 = vmul.f32 %v2568_v59, %v320_v41  ;;  %v340_v55 = vmul.f32 %v2570_v43, %v320_v41  ;;  %v336_v26 = vadd.f32 %v334_v2, %v311_v34  ;;  %v2022_v60 = vmul.f32 %v806_v58, %v1569_v31 }
  0xf4   : > { %v328_v57 = vadd.f32 %v326_v52, %v303_v39  ;;  %v343_v56 = vadd.f32 %v341_v51, %v318_v63  ;;  %v2571_v0 = vstv %s2565_s3  ;;  %v355_v12 = vadd.f32 %v1736_v1, %v329_v50  ;;  %s2060_s3 = sld [smem:[#allocation7 + %s829_s24]]  ;;  %s854_s24 = sadd.s32 26, %s1430_s29 }
  0xf5   : > { %v335_v23 = vadd.f32 %v333_v44, %v310_v49  ;;  %v342_v35 = vadd.f32 %v340_v55, %v317_v22  ;;  %v378_v36 = vmul.f32 %v2571_v0, %v373_v27  ;;  %v362_v40 = vadd.f32 %v1743_v3, %v336_v26  ;;  %v398_v38 = vpop.permute.xlu1 %397  ;;  %s2136_s29 = sld [smem:[#allocation7 + %s854_s24]] }
  0xf6   : > { %v2573_v37 = vstv %s2567_s20  ;;  %v2575_v45 = vstv %s2569_s8  ;;  %v369_v58 = vadd.f32 %v1756_v7, %v343_v56  ;;  %v354_v61 = vadd.f32 %v1746_v4, %v328_v57  ;;  %v396_v52 = vpop.permute.xlu0 %395  ;;  %s836_s20 = sadd.s32 25, %s1434_s30  ;;  %s2600_s8 = sld [smem:[#allocation54_spill]] }
  0xf7   : > { %v385_v39 = vmul.f32 %v2573_v37, %v373_v27  ;;  %v392_v41 = vmul.f32 %v2575_v45, %v373_v27  ;;  %v361_v49 = vadd.f32 %v1749_v5, %v335_v23  ;;  %v368_v2 = vadd.f32 %v1766_v18, %v342_v35 }
  0xf8   : > { %v380_v1 = vadd.f32 %v378_v36, %v355_v12  ;;  %v2577_v34 = vmov %v2571_v0  ;;  %v2578_v3 = vmov %v2573_v37  ;;  %v2579_v63 = vstv %s1946_s11 }
  0xf9   : > { %v377_v48 = vmul.f32 %v2577_v34, %v371_v53  ;;  %v384_v51 = vmul.f32 %v2578_v3, %v371_v53  ;;  %v2043_v22 = vmul.f32 %v2579_v63, %v1565_v30  ;;  %v387_v7 = vadd.f32 %v385_v39, %v362_v40 }
  0xfa   : > { %v2580_v4 = vmov %v2575_v45  ;;  %v2581_v5 = vstv %s2572_s26  ;;  %v2582_v43 = vstv %s2574_s2  ;;  %v394_v55 = vadd.f32 %v392_v41, %v369_v58  ;;  %v447_v45 = vpop.permute.xlu1 %446  ;;  %v445_v41 = vpop.permute.xlu0 %444  ;;  %s2601_s26 = sld [smem:[#allocation57_spill]] }
  0xfb   : > { %v391_v59 = vmul.f32 %v2580_v4, %v371_v53  ;;  %v403_v44 = vmul.f32 %v2581_v5, %v398_v38  ;;  %v410_v18 = vmul.f32 %v2582_v43, %v398_v38  ;;  %v379_v50 = vadd.f32 %v377_v48, %v354_v61  ;;  %s2608_s2 = sld [smem:[#allocation60_spill]] }
  0xfc   : > { %v2583_v26 = vstv %s2576_s25  ;;  %v2584_v27 = vmov %v2581_v5  ;;  %v386_v23 = vadd.f32 %v384_v51, %v361_v49  ;;  %v2587_v0 = vmov %v2582_v43  ;;  %s2609_s25 = sld [smem:[#allocation61_spill]] }
  0xfd   : > { %v417_v57 = vmul.f32 %v2583_v26, %v398_v38  ;;  %v402_v56 = vmul.f32 %v2584_v27, %v396_v52  ;;  %v405_v35 = vadd.f32 %v403_v44, %v380_v1  ;;  %v412_v30 = vadd.f32 %v410_v18, %v387_v7 }
  0xfe   : > { %v409_v36 = vmul.f32 %v2587_v0, %v396_v52  ;;  %v393_v53 = vadd.f32 %v391_v59, %v368_v2  ;;  %v2588_v37 = vmov %v2583_v26  ;;  %v2589_v1 = vstv %s2585_s17  ;;  %v472_v18 = vpop.permute.xlu1 %471  ;;  %s2618_s17 = sld [smem:[#allocation62_spill]] }
  0xff   : > { %v419_v12 = vadd.f32 %v417_v57, %v394_v55  ;;  %v404_v40 = vadd.f32 %v402_v56, %v379_v50  ;;  %v416_v39 = vmul.f32 %v2588_v37, %v396_v52  ;;  %v429_v61 = vadd.f32 %v1775_v25, %v405_v35  ;;  %v470_v55 = vpop.permute.xlu0 %469 }
 0x100   : > { %v411_v58 = vadd.f32 %v409_v36, %v386_v23  ;;  %v436_v49 = vadd.f32 %v1785_v11, %v412_v30  ;;  %v452_v34 = vmul.f32 %v2589_v1, %v447_v45  ;;  %v2590_v3 = vstv %s2586_s4  ;;  %s2619_s4 = sld [smem:[#allocation63_spill]] }
 0x101   : > { %v418_v48 = vadd.f32 %v416_v39, %v393_v53  ;;  %v443_v2 = vadd.f32 %v1788_v32, %v419_v12  ;;  %v459_v51 = vmul.f32 %v2590_v3, %v447_v45  ;;  %v2591_v38 = vstv %s2507_s5  ;;  %s2603_s5 = sld [smem:[#allocation58_spill]] }
 0x102   : > { %v466_v52 = vmul.f32 %v2591_v38, %v447_v45  ;;  %v454_v63 = vadd.f32 %v452_v34, %v429_v61  ;;  %v428_v7 = vadd.f32 %v1779_v29, %v404_v40  ;;  %v435_v25 = vadd.f32 %v1791_v33, %v411_v58 }
 0x103   : > { %v2592_v11 = vmov %v2589_v1  ;;  %v461_v59 = vadd.f32 %v459_v51, %v436_v49  ;;  %v442_v32 = vadd.f32 %v1799_v46, %v418_v48  ;;  %v2593_v44 = vmov %v2590_v3  ;;  %v522_v49 = vpop.permute.xlu1 %521  ;;  %v520_v1 = vpop.permute.xlu0 %519 }
 0x104   : > { %v451_v4 = vmul.f32 %v2592_v11, %v445_v41  ;;  %v468_v5 = vadd.f32 %v466_v52, %v443_v2  ;;  %v458_v43 = vmul.f32 %v2593_v44, %v445_v41  ;;  %v2594_v26 = vmov %v2591_v38 }
 0x105   : > { %v465_v57 = vmul.f32 %v2594_v26, %v445_v41  ;;  %v2595_v27 = vstv %s2508_s18  ;;  %v2596_v56 = vstv %s2510_s1  ;;  %v2597_v35 = vstv %s2511_s9  ;;  %s2094_s18 = sld [smem:[#allocation7 + %s836_s20]]  ;;  %s847_s1 = sadd.s32 26, %s1419_s27 }
 0x106   : > { %v453_v50 = vadd.f32 %v451_v4, %v428_v7  ;;  %v477_v29 = vmul.f32 %v2595_v27, %v472_v18  ;;  %v484_v33 = vmul.f32 %v2596_v56, %v472_v18  ;;  %v460_v23 = vadd.f32 %v458_v43, %v435_v25  ;;  %s2606_s9 = sld [smem:[#allocation59_spill]] }
 0x107   : > { %v491_v30 = vmul.f32 %v2597_v35, %v472_v18  ;;  %v2598_v0 = vmov %v2595_v27  ;;  %v2599_v46 = vmov %v2596_v56  ;;  %v467_v12 = vadd.f32 %v465_v57, %v442_v32  ;;  %v547_v26 = vpop.permute.xlu1 %546  ;;  %v545_v57 = vpop.permute.xlu0 %544  ;;  %s2115_s27 = sld [smem:[#allocation7 + %s847_s1]] }
 0x108   : > { %v476_v36 = vmul.f32 %v2598_v0, %v470_v55  ;;  %v483_v53 = vmul.f32 %v2599_v46, %v470_v55  ;;  %v479_v40 = vadd.f32 %v477_v29, %v454_v63  ;;  %v486_v37 = vadd.f32 %v484_v33, %v461_v59  ;;  %s2624_s20 = sld [smem:[#allocation64_spill]] }
 0x109   : > { %v2602_v39 = vmov %v2597_v35  ;;  %v493_v41 = vadd.f32 %v491_v30, %v468_v5  ;;  %v831_v34 = vstv %s2060_s3  ;;  %v2604_v51 = vstv %s2600_s8  ;;  %s861_s8 = sadd.s32 26, %s1434_s30 }
 0x10a   : > { %v490_v45 = vmul.f32 %v2602_v39, %v470_v55  ;;  %v478_v58 = vadd.f32 %v476_v36, %v453_v50  ;;  %v485_v61 = vadd.f32 %v483_v53, %v460_v23  ;;  %v504_v2 = vadd.f32 %v1814_v13, %v479_v40  ;;  %s2174_s30 = sld [smem:[#allocation7 + %s861_s8]] }
 0x10b   : > { %v511_v3 = vadd.f32 %v1825_v6, %v486_v37  ;;  %v527_v38 = vmul.f32 %v2604_v51, %v522_v49  ;;  %v518_v52 = vadd.f32 %v1828_v62, %v493_v41  ;;  %v2605_v63 = vstv %s2601_s26 }
 0x10c   : > { %v492_v48 = vadd.f32 %v490_v45, %v467_v12  ;;  %v534_v7 = vmul.f32 %v2605_v63, %v522_v49  ;;  %v2607_v25 = vstv %s2603_s5  ;;  %v503_v4 = vadd.f32 %v1818_v14, %v478_v58  ;;  %v597_v58 = vpop.permute.xlu1 %596 }
 0x10d   : > { %v541_v11 = vmul.f32 %v2607_v25, %v522_v49  ;;  %v529_v59 = vadd.f32 %v527_v38, %v504_v2  ;;  %v510_v13 = vadd.f32 %v1831_v9, %v485_v61  ;;  %v2610_v5 = vmov %v2604_v51  ;;  %v595_v61 = vpop.permute.xlu0 %594 }
 0x10e   : > { %v517_v6 = vadd.f32 %v1840_v28, %v492_v48  ;;  %v526_v32 = vmul.f32 %v2610_v5, %v520_v1  ;;  %v536_v62 = vadd.f32 %v534_v7, %v511_v3  ;;  %v2611_v43 = vmov %v2605_v63 }
 0x10f   : > { %v543_v44 = vadd.f32 %v541_v11, %v518_v52  ;;  %v533_v18 = vmul.f32 %v2611_v43, %v520_v1  ;;  %v2612_v55 = vmov %v2607_v25  ;;  %v2613_v27 = vstv %s2606_s9 }
 0x110   : > { %v540_v50 = vmul.f32 %v2612_v55, %v520_v1  ;;  %v528_v14 = vadd.f32 %v526_v32, %v503_v4  ;;  %v552_v9 = vmul.f32 %v2613_v27, %v547_v26  ;;  %v2614_v29 = vstv %s2608_s2  ;;  %v622_v43 = vpop.permute.xlu1 %621 }
 0x111   : > { %v559_v28 = vmul.f32 %v2614_v29, %v547_v26  ;;  %v2615_v56 = vstv %s2609_s25  ;;  %v535_v23 = vadd.f32 %v533_v18, %v510_v13  ;;  %v2616_v30 = vmov %v2613_v27  ;;  %v620_v18 = vpop.permute.xlu0 %619  ;;  %s1219_s25 = smov [#allocation9]  }
 0x112   : > { %v566_v33 = vmul.f32 %v2615_v56, %v547_v26  ;;  %v542_v35 = vadd.f32 %v540_v50, %v517_v6  ;;  %v551_v0 = vmul.f32 %v2616_v30, %v545_v57  ;;  %v2617_v36 = vmov %v2614_v29 }
 0x113   : > { %v558_v46 = vmul.f32 %v2617_v36, %v545_v57  ;;  %v554_v53 = vadd.f32 %v552_v9, %v529_v59  ;;  %v561_v12 = vadd.f32 %v559_v28, %v536_v62  ;;  %v2620_v37 = vmov %v2615_v56 }
 0x114   : > { %v568_v40 = vadd.f32 %v566_v33, %v543_v44  ;;  %v565_v39 = vmul.f32 %v2620_v37, %v545_v57  ;;  %v553_v45 = vadd.f32 %v551_v0, %v528_v14  ;;  %v838_v49 = vstv %s2094_s18  ;;  %s2678_s18 = sld [smem:[#allocation78_spill]] }
 0x115   : > { %v560_v41 = vadd.f32 %v558_v46, %v535_v23  ;;  %v2621_v1 = vstv %s1946_s11  ;;  %v579_v3 = vadd.f32 %v1850_v19, %v554_v53  ;;  %v586_v51 = vadd.f32 %v1857_v54, %v561_v12  ;;  %s2629_s11 = sld [smem:[#allocation23_spill]]  ;;  %v669_v37 = vpop.permute.xlu0 %668 }
 0x116   : > { %v2134_v48 = vmul.f32 %v2621_v1, %v1569_v31  ;;  %v567_v2 = vadd.f32 %v565_v39, %v542_v35  ;;  %v593_v38 = vadd.f32 %v1867_v24, %v568_v40  ;;  %v2622_v52 = vstv %s2618_s17  ;;  %v671_v40 = vpop.permute.xlu1 %670 }
 0x117   : > { %v602_v63 = vmul.f32 %v2622_v52, %v597_v58  ;;  %v2623_v7 = vstv %s2619_s4  ;;  %v2625_v11 = vstv %s1668_s28  ;;  %v578_v4 = vadd.f32 %v1860_v42, %v553_v45  ;;  %s2635_s28 = sld [smem:[#allocation38_spill]] }
 0x118   : > { %v609_v25 = vmul.f32 %v2623_v7, %v597_v58  ;;  %v616_v31 = vmul.f32 %v2625_v11, %v597_v58  ;;  %v585_v59 = vadd.f32 %v1871_v17, %v560_v41  ;;  %v592_v19 = vadd.f32 %v1879_v15, %v567_v2 }
 0x119   : > { %v2626_v13 = vmov %v2622_v52  ;;  %v2627_v24 = vmov %v2623_v7  ;;  %v604_v5 = vadd.f32 %v602_v63, %v579_v3  ;;  %v2628_v62 = vmov %v2625_v11 }
 0x11a   : > { %v601_v54 = vmul.f32 %v2626_v13, %v595_v61  ;;  %v608_v6 = vmul.f32 %v2627_v24, %v595_v61  ;;  %v611_v32 = vadd.f32 %v609_v25, %v586_v51  ;;  %v615_v44 = vmul.f32 %v2628_v62, %v595_v61  ;;  %v696_v24 = vpop.permute.xlu1 %695 }
 0x11b   : > { %v849_v42 = vstv %s2115_s27  ;;  %v618_v55 = vadd.f32 %v616_v31, %v593_v38  ;;  %v2630_v50 = vstv %s2624_s20  ;;  %v2631_v15 = vstv %s2520_s16  ;;  %s2171_s26 = sld [smem:[#allocation8 + %s2629_s11]]  ;;  %s2644_s16 = sadd.s32 1, %s2629_s11 }
 0x11c   : > { %v603_v17 = vadd.f32 %v601_v54, %v578_v4  ;;  %v627_v26 = vmul.f32 %v2630_v50, %v622_v43  ;;  %v634_v57 = vmul.f32 %v2631_v15, %v622_v43  ;;  %v610_v14 = vadd.f32 %v608_v6, %v585_v59  ;;  %v694_v6 = vpop.permute.xlu0 %693  ;;  %s1142_s27 = sshll.u32 %s1219_s25, 4  ;;  %s1143_s27 = int_to_ptr.vmem [resolvable:$false] %s1142_s27 }
 0x11d   : > { %v2632_v27 = vstv %s2521_s10  ;;  %v2633_v29 = vmov %v2630_v50  ;;  %v2634_v56 = vmov %v2631_v15  ;;  %v617_v23 = vadd.f32 %v615_v44, %v592_v19  ;;  %s2196_s10 = sld [smem:[#allocation8 + %s2644_s16]]  ;;  %s1144_s24 = scalar_lea.vmem %s1143_s27, 1536 }
 0x11e   : > { %v641_v9 = vmul.f32 %v2632_v27, %v622_v43  ;;  %v626_v28 = vmul.f32 %v2633_v29, %v620_v18  ;;  %v633_v33 = vmul.f32 %v2634_v56, %v620_v18  ;;  %v629_v35 = vadd.f32 %v627_v26, %v604_v5 }
 0x11f   : > { %v636_v30 = vadd.f32 %v634_v57, %v611_v32  ;;  %v2636_v0 = vmov %v2632_v27  ;;  %v856_v39 = vstv %s2136_s29  ;;  %v2637_v61 = vstv %s2635_s28 }
 0x120   : > { %v640_v36 = vmul.f32 %v2636_v0, %v620_v18  ;;  %v643_v46 = vadd.f32 %v641_v9, %v618_v55  ;;  %v628_v53 = vadd.f32 %v626_v28, %v603_v17  ;;  %v635_v12 = vadd.f32 %v633_v33, %v610_v14  ;;  %v746_v33 = vpop.permute.xlu1 %745 }
 0x121   : > { %v653_v41 = vadd.f32 %v1889_v16, %v629_v35  ;;  %v660_v58 = vadd.f32 %v1895_v21, %v636_v30  ;;  %v676_v1 = vmul.f32 %v2637_v61, %v671_v40  ;;  %v2638_v3 = vstv %s2523_s21  ;;  %v2640_v16 = vld [vmem:[#allocation66_spill] sm:$0xff] }
 0x122   : > { %v642_v45 = vadd.f32 %v640_v36, %v617_v23  ;;  %v667_v2 = vadd.f32 %v1907_v8, %v643_v46  ;;  %v683_v51 = vmul.f32 %v2638_v3, %v671_v40  ;;  %v2639_v38 = vstv %s1761_s19  ;;  %s2650_s19 = sld [smem:[#allocation55_spill]]  ;;  %v744_v23 = vpop.permute.xlu0 %743  ;;  %v2653_v36 = vld [vmem:[#allocation67_spill] sm:$0xff] }
 0x123   : > { %v690_v52 = vmul.f32 %v2639_v38, %v671_v40  ;;  %v652_v63 = vadd.f32 %v1898_v10, %v628_v53  ;;  %v678_v7 = vadd.f32 %v676_v1, %v653_v41  ;;  %v659_v25 = vadd.f32 %v1901_v20, %v635_v12  ;;  %v2654_v53 = vld [vmem:[#allocation69_spill] sm:$0xff]  ;;  %v2655_v40 = vld [vmem:[#allocation70_spill] sm:$0xff] }
 0x124   : > { %v666_v21 = vadd.f32 %v2640_v16, %v642_v45  ;;  %v2641_v11 = vmov %v2637_v61  ;;  %v685_v4 = vadd.f32 %v683_v51, %v660_v58  ;;  %v2642_v59 = vmov %v2638_v3  ;;  %v2659_v3 = vld [vmem:[#allocation68_spill] sm:$0xff] }
 0x125   : > { %v675_v31 = vmul.f32 %v2641_v11, %v669_v37  ;;  %v692_v8 = vadd.f32 %v690_v52, %v667_v2  ;;  %v682_v19 = vmul.f32 %v2642_v59, %v669_v37  ;;  %v2643_v13 = vmov %v2639_v38  ;;  %v2661_v38 = vld [vmem:[#allocation71_spill] sm:$0xff] }
 0x126   : > { %v689_v54 = vmul.f32 %v2643_v13, %v669_v37  ;;  %v2645_v20 = vstv %s1770_s6  ;;  %v2646_v32 = vstv %s2524_s7  ;;  %v2647_v44 = vstv %s2525_s12  ;;  %s2652_s6 = sadd.s32 2, %s2629_s11  ;;  %s2660_s12 = sld [smem:[#allocation15_spill]]  ;;  %v769_v13 = vpop.permute.xlu0 %768 }
 0x127   : > { %v677_v10 = vadd.f32 %v675_v31, %v652_v63  ;;  %v701_v5 = vmul.f32 %v2645_v20, %v696_v24  ;;  %v708_v62 = vmul.f32 %v2646_v32, %v696_v24  ;;  %v715_v43 = vmul.f32 %v2647_v44, %v696_v24  ;;  %s2214_s21 = sld [smem:[#allocation8 + %s2652_s6]]  ;;  %v2662_v63 = vld [vmem:[#allocation72_spill] sm:$0xff] }
 0x128   : > { %v684_v18 = vadd.f32 %v682_v19, %v659_v25  ;;  %v691_v55 = vadd.f32 %v689_v54, %v666_v21  ;;  %v2648_v17 = vmov %v2645_v20  ;;  %v2649_v26 = vmov %v2646_v32  ;;  %v771_v19 = vpop.permute.xlu1 %770 }
 0x129   : > { %v700_v50 = vmul.f32 %v2648_v17, %v694_v6  ;;  %v707_v15 = vmul.f32 %v2649_v26, %v694_v6  ;;  %v703_v57 = vadd.f32 %v701_v5, %v678_v7  ;;  %v710_v14 = vadd.f32 %v708_v62, %v685_v4 }
 0x12a   : > { %v717_v27 = vadd.f32 %v715_v43, %v692_v8  ;;  %v2651_v9 = vmov %v2647_v44  ;;  %v863_v35 = vstv %s2174_s30  ;;  %v869_v30 = vstv %s2171_s26 }
 0x12b   : > { %v714_v29 = vmul.f32 %v2651_v9, %v694_v6  ;;  %v702_v28 = vadd.f32 %v700_v50, %v677_v10  ;;  %v709_v56 = vadd.f32 %v707_v15, %v684_v18  ;;  %v728_v46 = vadd.f32 %v2653_v36, %v703_v57  ;;  %v2672_v36 = vld [vmem:[#allocation73_spill] sm:$0xff] }
 0x12c   : > { %v735_v12 = vadd.f32 %v2654_v53, %v710_v14  ;;  %v742_v37 = vadd.f32 %v2655_v40, %v717_v27  ;;  %v2656_v45 = vstv %s2650_s19  ;;  %v2657_v58 = vstv %s1843_s0  ;;  %s186_s7 = sand.u32 1, %s2660_s12  }
 0x12d   : > { %v716_v0 = vadd.f32 %v714_v29, %v691_v55  ;;  %v751_v41 = vmul.f32 %v2656_v45, %v746_v33  ;;  %v758_v61 = vmul.f32 %v2657_v58, %v746_v33  ;;  %v2658_v1 = vstv %s1852_s22  ;;  %s2250_s0 = smul.u32 48, %s186_s7  ;;  %s2298_s9 = scalar_lea.sflag [#allocation4], %s186_s7 }
 0x12e   : > { %v765_v2 = vmul.f32 %v2658_v1, %v746_v33  ;;  %v727_v51 = vadd.f32 %v2659_v3, %v702_v28  ;;  %v734_v52 = vadd.f32 %v2661_v38, %v709_v56  ;;  %v2663_v25 = vmov %v2656_v45  ;;  %v821_v56 = vpop.permute.xlu1 %820  ;;  %v819_v33 = vpop.permute.xlu0 %818 }
 0x12f   : > { %v741_v7 = vadd.f32 %v2662_v63, %v716_v0  ;;  %v750_v16 = vmul.f32 %v2663_v25, %v744_v23  ;;  %v2664_v21 = vmov %v2657_v58  ;;  %v753_v31 = vadd.f32 %v751_v41, %v728_v46  ;;  %v2674_v58 = vld [vmem:[#allocation74_spill] sm:$0xff] }
 0x130   : > { %v757_v11 = vmul.f32 %v2664_v21, %v744_v23  ;;  %v760_v4 = vadd.f32 %v758_v61, %v735_v12  ;;  %v2665_v8 = vmov %v2658_v1  ;;  %v875_v54 = vstv %s2196_s10 }
 0x131   : > { %v764_v59 = vmul.f32 %v2665_v8, %v744_v23  ;;  %v767_v24 = vadd.f32 %v765_v2, %v742_v37  ;;  %v752_v6 = vadd.f32 %v750_v16, %v727_v51  ;;  %v2666_v10 = vstv %s1874_s13  ;;  %s2676_s13 = sld [smem:[#allocation18_spill]] }
 0x132   : > { %v776_v20 = vmul.f32 %v2666_v10, %v771_v19  ;;  %v2667_v5 = vstv %s1883_s14  ;;  %v759_v62 = vadd.f32 %v757_v11, %v734_v52  ;;  %v2668_v44 = vstv %s1892_s15  ;;  %v844_v25 = vpop.permute.xlu0 %843  ;;  %s188_s14 = scalar_lea.vmem [#allocation9], %s2250_s0 }
 0x133   : > { %v783_v32 = vmul.f32 %v2667_v5, %v771_v19  ;;  %v790_v43 = vmul.f32 %v2668_v44, %v771_v19  ;;  %v2669_v18 = vmov %v2666_v10  ;;  %v2670_v17 = vmov %v2667_v5  ;;  %s903_s15 = sshll.u32 %s188_s14, 4  ;;  %s2294_s15 = int_to_ptr.vmem [resolvable:$true] %s903_s15 }
 0x134   : > { %v775_v55 = vmul.f32 %v2669_v18, %v769_v13  ;;  %v782_v50 = vmul.f32 %v2670_v17, %v769_v13  ;;  %v766_v26 = vadd.f32 %v764_v59, %v741_v7  ;;  %v778_v15 = vadd.f32 %v776_v20, %v753_v31  ;;  %v846_v7 = vpop.permute.xlu1 %845  ;;  %s1138_s2 = scalar_lea.vmem %s2294_s15, 768  ;;  %p1145_p13 = scmp.lt.s32.totalorder %s2294_s15, %s1143_s27 }
 0x135   : > { %v785_v57 = vadd.f32 %v783_v32, %v760_v4  ;;  %v2671_v14 = vmov %v2668_v44  ;;  %v792_v9 = vadd.f32 %v790_v43, %v767_v24  ;;  %v882_v23 = vstv %s2214_s21  ;;  %p1139_p9 = scmp.ne.s32.totalorder %s2294_s15, %s1138_s2  ;;  %p1146_p8 = scmp.lt.s32.totalorder %s1144_s24, %s1138_s2 }
 0x136   : > { %v789_v27 = vmul.f32 %v2671_v14, %v769_v13  ;;  %v777_v29 = vadd.f32 %v775_v55, %v752_v6  ;;  %v784_v28 = vadd.f32 %v782_v50, %v759_v62  ;;  %v803_v46 = vadd.f32 %v2672_v36, %v778_v15 }
 0x137   : > { %v810_v53 = vadd.f32 %v1991_v47, %v785_v57  ;;  %v2673_v12 = vstv %s1904_s23  ;;  %v817_v37 = vadd.f32 %v2043_v22, %v792_v9  ;;  %v833_v45 = vmul.f32 %v831_v34, %v821_v56  ;;  %s1008_s22 = smul.u32 768, %s2676_s13  ;;  %p1140_p10 = pnand %p1139_p9, %p1280_p5 }
 0x138   : > { %v791_v0 = vadd.f32 %v789_v27, %v766_v26  ;;  %v826_v40 = vmul.f32 %v2673_v12, %v821_v56  ;;  %v840_v41 = vmul.f32 %v838_v49, %v821_v56  ;;  %v802_v61 = vadd.f32 %v2674_v58, %v777_v29  ;;  %p1147_p11 = por %p1146_p8, %p1145_p13 }
 0x139   : > { %v809_v2 = vadd.f32 %v2022_v60, %v784_v28  ;;  %v2675_v3 = vmov %v2673_v12  ;;  %v835_v38 = vadd.f32 %v833_v45, %v810_v53  ;;  %v832_v52 = vmul.f32 %v831_v34, %v819_v33  ;;  %s2292_s1 = scalar_lea.hbm %s2678_s18, %s1008_s22  ;;  %p1141_p12 = pneg %p1140_p10 }
 0x13a   : > { %v828_v1 = vadd.f32 %v826_v40, %v803_v46  ;;  %v816_v47 = vadd.f32 %v2134_v48, %v791_v0  ;;  %v825_v51 = vmul.f32 %v2675_v3, %v819_v33  ;;  %v842_v22 = vadd.f32 %v840_v41, %v817_v37 }
 0x13b   : > { %v839_v63 = vmul.f32 %v838_v49, %v819_v33  ;;  %v851_v21 = vmul.f32 %v849_v42, %v846_v7  ;;  %v858_v60 = vmul.f32 %v856_v39, %v846_v7  ;;  %v865_v48 = vmul.f32 %v863_v35, %v846_v7  ;;  %p1148_p0 = pnand %p1147_p11, %p1141_p12 }
 0x13c   : > { %v827_v16 = vadd.f32 %v825_v51, %v802_v61  ;;  %v834_v11 = vadd.f32 %v832_v52, %v809_v2  ;;  %v850_v4 = vmul.f32 %v849_v42, %v844_v25  ;;  %v857_v34 = vmul.f32 %v856_v39, %v844_v25 }
 0x13d   : > { %v841_v31 = vadd.f32 %v839_v63, %v816_v47  ;;  %v853_v49 = vadd.f32 %v851_v21, %v828_v1  ;;  %v860_v8 = vadd.f32 %v858_v60, %v835_v38  ;;  %v867_v59 = vadd.f32 %v865_v48, %v842_v22 }
 0x13e   : > { %v864_v19 = vmul.f32 %v863_v35, %v844_v25  ;;  %v852_v13 = vadd.f32 %v850_v4, %v827_v16  ;;  %v859_v24 = vadd.f32 %v857_v34, %v834_v11 }
 0x13f   : > { %v871_v6 = vadd.f32 %v869_v30, %v853_v49  ;;  %v877_v10 = vadd.f32 %v875_v54, %v860_v8  ;;  %v884_v20 = vadd.f32 %v882_v23, %v867_v59 }
 0x140   : > { %v866_v5 = vadd.f32 %v864_v19, %v841_v31  ;;  %v870_v42 = vadd.f32 %v869_v30, %v852_v13  ;;  %v876_v39 = vadd.f32 %v875_v54, %v859_v24 }
 0x141   : > { %873 = vst [vmem:[%s188_s14 + $0x8] sm:$0x3f] %v871_v6  ;;  %999 = vst [vmem:[%s188_s14 + $0x18] sm:$0x3f] %v877_v10 }
 0x142   : > { %1001 = vst [vmem:[%s188_s14 + $0x28] sm:$0x3f] %v884_v20  ;;  %v883_v35 = vadd.f32 %v882_v23, %v866_v5  ;;  %872 = vst [vmem:[%s188_s14] sm:$0xff] %v870_v42 }
 0x143   : > { %998 = vst [vmem:[%s188_s14 + $0x10] sm:$0xff] %v876_v39 }
 0x144   : > { %1000 = vst [vmem:[%s188_s14 + $0x20] sm:$0xff] %v883_v35 }
 0x145   : > { %1151 = shalt.err (!%p1148_p0)
}
 0x146   : > { %s1152_s17 = scalar_lea.hbm %s2292_s1, 768  ;;  %s1156_s20 = scalar_lea.hbm %s2678_s18, 1536 }
 0x147   : > { %p1153_p1 = scmp.ne.s32.totalorder %s2292_s1, %s1152_s17  ;;  %p1157_p4 = scmp.lt.s32.totalorder %s2292_s1, %s2678_s18 }
 0x148   : > { %p1158_p7 = scmp.lt.s32.totalorder %s1156_s20, %s1152_s17 }
 0x149   : > { %p1154_p2 = pnand %p1153_p1, %p1280_p5 }
 0x14a   : > { %p1159_p9 = por %p1158_p7, %p1157_p4 }
 0x14b   : > { %p1155_p3 = pneg %p1154_p2 }
 0x14d   : > { %p1160_p10 = pnand %p1159_p9, %p1155_p3 }
 0x14f   : > { %1163 = shalt.err (!%p1160_p10)
}
 0x150   : > { %s1220_s28 = smov 128   ;;  %s1221_s26 = smov 8  }
 0x151   : > { %1022 = dma.vmem_to_hbm [thread:$0]  (%p1280_p5), %s2294_s15, 768, %s2292_s1, %s2298_s9, %s1220_s28, %s1220_s28, %s1221_s26  }
 0x152 PF: > { %s2679_s30 = sld [smem:[#allocation17_spill]] }
 0x153   : > { %s2680_s16 = sld [smem:[#allocation14_spill]] }
 0x158   : > { %p1044_p12 = scmp.ge.s32.totalorder %s2679_s30, 2 }
 0x159   : > { %s918_s19 = sand.u32 1, %s2680_s16  }
 0x15a   : > { %p1035_p13 = pnand %p1044_p12, %p1284_p6  ;;  %s919_s6 = scalar_lea.sflag [#allocation4], %s918_s19 }
 0x15c   : > { %p1036_p8 = pneg %p1035_p13 }
 0x15e   : > { %1193 = dma.done.wait (%p1036_p8), %s919_s6, 768  }
 0x15f   : > { %1195 = vsyncadd (%p1036_p8), %s919_s6, 4294966528  ;;  %s2682_s15 = sld [smem:[#allocation19_spill]] }
 0x160   : > { %s2683_s12 = sld [smem:[#allocation15_spill]] }
 0x161   : > { %s2684_s13 = sld [smem:[#allocation16_spill]] }
 0x162   : > { %s2685_s14 = sld [smem:[#allocation20_spill]] }
 0x165   : > { %p16_p11 = scmp.ge.s32.totalorder %s2682_s15, 4  }
 0x167   :  { %18 = sbr.rel (!%p16_p11) target bundleno = 11 (0xb), region = 83 }
 0x16c   :  { %924 = vsyncpa [#allocation3], 1 }
 0x16d   :  { %926 = vsyncpa [#allocation3 + $0x1], 1 }
 0x16e   :  { %927 = vsyncpa [#allocation4], 1 }
 0x16f   :  { %929 = vsyncpa [#allocation4 + $0x1], 1 }
 0x170   :  { %930 = vsyncpa [#allocation5], 1 }
 0x171   :  { %932 = vsyncpa [#allocation5 + $0x1], 1 }
 0x172   :  { %933 = vsyncpa [#allocation6], 1 }
 0x173   :  { %935 = vsyncpa [#allocation6 + $0x1], 1 }

</bundles_post_ra>
